<compile_context>
chip_gen: v5e
topology: v5e:2x2
jax: 0.10.0
libtpu: 0.0.40
codegen_flags: <defaults>
</compile_context>

<pallas_src>
import functools
import math

import jax
import jax.numpy as jnp
from jax.experimental import pallas as pl
from jax.experimental.pallas import tpu as pltpu

# Safe raised VMEM limit on every generation (v7x has 64 MiB/TC; v5e/v6e 128 MiB).
# Working set here is tiny (<1 MiB), this is just explicit headroom.
_VMEM_LIMIT_BYTES = 40 * 1024 * 1024


# ---------------------------------------------------------------------------
# Fused SA kernel (one batch element per grid step)
# ---------------------------------------------------------------------------


def _sa_fused_kernel(x_ref, mask_ref,
                     wq_ref, bq_ref, wk_ref, bk_ref, wv_ref, bv_ref,
                     wm_ref, bm_ref, ln1a_ref, ln1b_ref,
                     w1_ref, b1_ref, w2_ref, b2_ref,
                     ln2a_ref, ln2b_ref,
                     o_ref, *, num_heads, scale, eps):
    x = x_ref[0].astype(jnp.float32)          # (S, H)
    m = mask_ref[0]                           # (S, S) float32, 1.0 == masked
    hidden = x.shape[-1]

    def layer_norm(z, a, b):
        # torch LayerNorm variant: unbiased std (ddof=1), divide by (std + eps).
        mean = jnp.mean(z, axis=-1, keepdims=True)
        diff = z - mean
        var = jnp.sum(diff * diff, axis=-1, keepdims=True) * (1.0 / (hidden - 1))
        inv = pl.reciprocal(jnp.sqrt(var) + jnp.float32(eps), approx=False)
        return a * (diff * inv) + b

    # ---- multi-head attention: per-head weights indexed along the leading axis ----
    att = None
    for h in range(num_heads):
        qh = jnp.dot(x, wq_ref[h].astype(jnp.float32),
                     preferred_element_type=jnp.float32) + bq_ref[h].astype(jnp.float32)
        kh = jnp.dot(x, wk_ref[h].astype(jnp.float32),
                     preferred_element_type=jnp.float32) + bk_ref[h].astype(jnp.float32)
        vh = jnp.dot(x, wv_ref[h].astype(jnp.float32),
                     preferred_element_type=jnp.float32) + bv_ref[h].astype(jnp.float32)

        # scores = q @ k^T / sqrt(d); masked_fill(mask, -1e9) as in the torch module.
        scores = jax.lax.dot_general(
            qh, kh, (((1,), (1,)), ((), ())),
            preferred_element_type=jnp.float32) * jnp.float32(scale)
        scores = jnp.where(m > 0.5, jnp.float32(-1e9), scores)

        # numerically-stable softmax along the last axis
        smax = jnp.max(scores, axis=-1, keepdims=True)
        p = jnp.exp(scores - smax)
        p = p * pl.reciprocal(jnp.sum(p, axis=-1, keepdims=True), approx=False)

        ctx_h = jnp.dot(p, vh, preferred_element_type=jnp.float32)         # (S, d)
        part = jnp.dot(ctx_h, wm_ref[h].astype(jnp.float32),
                       preferred_element_type=jnp.float32)                 # (S, H)
        att = part if att is None else att + part
    att = att + bm_ref[...].astype(jnp.float32)

    # ---- residual + LayerNorm 1 ----
    x1 = layer_norm(x + att,
                    ln1a_ref[...].astype(jnp.float32),
                    ln1b_ref[...].astype(jnp.float32))

    # ---- FFN: Linear -> ReLU -> Linear ----
    hdn = jnp.dot(x1, w1_ref[...].astype(jnp.float32),
                  preferred_element_type=jnp.float32) + b1_ref[...].astype(jnp.float32)
    hdn = jnp.maximum(hdn, 0.0)
    y = jnp.dot(hdn, w2_ref[...].astype(jnp.float32),
                preferred_element_type=jnp.float32) + b2_ref[...].astype(jnp.float32)

    # ---- residual + LayerNorm 2 ----
    out = layer_norm(x1 + y,
                     ln2a_ref[...].astype(jnp.float32),
                     ln2b_ref[...].astype(jnp.float32))
    o_ref[0] = out.astype(o_ref.dtype)


# ---------------------------------------------------------------------------
# Wrapper
# ---------------------------------------------------------------------------


def sa_forward_pallas(x, x_mask, params, *, num_heads, eps=1e-6):
    """Pallas forward of SA (eval mode). Weights are in torch layout (Linear W: (out, in))."""
    b, s, hidden = x.shape
    d = hidden // num_heads
    fc = params["w1"].shape[0]
    f32 = jnp.float32

    def head_w(w):  # torch Linear weight (out, in) -> (num_heads, in, d_head)
        return jnp.transpose(w).reshape(hidden, num_heads, d).transpose(1, 0, 2)

    def head_b(bias):
        return bias.reshape(num_heads, 1, d)

    wq, bq = head_w(params["wq"]).astype(f32), head_b(params["bq"]).astype(f32)
    wk, bk = head_w(params["wk"]).astype(f32), head_b(params["bk"]).astype(f32)
    wv, bv = head_w(params["wv"]).astype(f32), head_b(params["bv"]).astype(f32)
    wm = jnp.transpose(params["wm"]).reshape(num_heads, d, hidden).astype(f32)
    bm = params["bm"].reshape(1, hidden).astype(f32)
    w1 = jnp.transpose(params["w1"]).astype(f32)          # (hidden, fc)
    b1 = params["fb1"].reshape(1, fc).astype(f32)
    w2 = jnp.transpose(params["w2"]).astype(f32)          # (fc, hidden)
    b2 = params["fb2"].reshape(1, hidden).astype(f32)
    ln1a = params["ln1_a"].reshape(1, hidden).astype(f32)
    ln1b = params["ln1_b"].reshape(1, hidden).astype(f32)
    ln2a = params["ln2_a"].reshape(1, hidden).astype(f32)
    ln2b = params["ln2_b"].reshape(1, hidden).astype(f32)

    # Key-padding / additive boolean mask, any shape broadcastable to (B, 1, S, S)
    # (e.g. torch's (B, 1, 1, S)); 1.0 == masked position.
    # TODO(synk): per-head masks (B, H, S, S) are not supported by this layout.
    mask_f = jnp.broadcast_to(x_mask, (b, 1, s, s)).reshape(b, s, s).astype(f32)

    per_batch = lambda i: (i, 0, 0)
    full3 = lambda i: (0, 0, 0)
    full2 = lambda i: (0, 0)

    kernel = functools.partial(_sa_fused_kernel, num_heads=num_heads,
                               scale=1.0 / math.sqrt(d), eps=eps)

    out = pl.pallas_call(
        kernel,
        out_shape=jax.ShapeDtypeStruct((b, s, hidden), x.dtype),
        grid_spec=pltpu.PrefetchScalarGridSpec(
            num_scalar_prefetch=0,
            grid=(b,),
            in_specs=[
                pl.BlockSpec((1, s, hidden), per_batch),       # x
                pl.BlockSpec((1, s, s), per_batch),            # mask
                pl.BlockSpec((num_heads, hidden, d), full3),   # wq (per head)
                pl.BlockSpec((num_heads, 1, d), full3),        # bq
                pl.BlockSpec((num_heads, hidden, d), full3),   # wk
                pl.BlockSpec((num_heads, 1, d), full3),        # bk
                pl.BlockSpec((num_heads, hidden, d), full3),   # wv
                pl.BlockSpec((num_heads, 1, d), full3),        # bv
                pl.BlockSpec((num_heads, d, hidden), full3),   # wm (per head)
                pl.BlockSpec((1, hidden), full2),              # bm
                pl.BlockSpec((1, hidden), full2),              # ln1_a
                pl.BlockSpec((1, hidden), full2),              # ln1_b
                pl.BlockSpec((hidden, fc), full2),             # w1
                pl.BlockSpec((1, fc), full2),                  # b1
                pl.BlockSpec((fc, hidden), full2),             # w2
                pl.BlockSpec((1, hidden), full2),              # b2
                pl.BlockSpec((1, hidden), full2),              # ln2_a
                pl.BlockSpec((1, hidden), full2),              # ln2_b
            ],
            out_specs=pl.BlockSpec((1, s, hidden), per_batch),
        ),
        compiler_params=pltpu.CompilerParams(
            dimension_semantics=("parallel",),
            vmem_limit_bytes=_VMEM_LIMIT_BYTES,
        ),
    )(x, mask_f, wq, bq, wk, bk, wv, bv, wm, bm,
      ln1a, ln1b, w1, b1, w2, b2, ln2a, ln2b)
    return out


# ---------------------------------------------------------------------------
# Pure-JAX reference (mirrors the torch module in eval mode)
# ---------------------------------------------------------------------------


def _layer_norm_ref(x, a, b_param, eps):
    mean = jnp.mean(x, axis=-1, keepdims=True)
    std = jnp.sqrt(jnp.var(x, axis=-1, keepdims=True, ddof=1))  # unbiased, torch .std()
    return a * (x - mean) / (std + eps) + b_param


def sa_ref(x, x_mask, params, *, num_heads, eps=1e-6):
    b, s, hidden = x.shape
    d_head = hidden // num_heads

    def lin(z, w, bias):
        return jnp.einsum("...i,oi->...o", z, w) + bias

    def heads(z):
        return z.reshape(b, s, num_heads, d_head).transpose(0, 2, 1, 3)

    q = heads(lin(x, params["wq"], params["bq"]))
    k = heads(lin(x, params["wk"], params["bk"]))
    v = heads(lin(x, params["wv"], params["bv"]))

    scores = jnp.einsum("bhqd,bhkd->bhqk", q, k) / math.sqrt(d_head)
    scores = jnp.where(jnp.broadcast_to(x_mask, scores.shape), jnp.float32(-1e9), scores)
    att = jax.nn.softmax(scores, axis=-1)
    ctx = jnp.einsum("bhqk,bhkd->bhqd", att, v)
    ctx = ctx.transpose(0, 2, 1, 3).reshape(b, s, hidden)
    merged = lin(ctx, params["wm"], params["bm"])

    x1 = _layer_norm_ref(x + merged, params["ln1_a"], params["ln1_b"], eps)
    h = jnp.maximum(lin(x1, params["w1"], params["fb1"]), 0.0)
    y = lin(h, params["w2"], params["fb2"])
    return _layer_norm_ref(x1 + y, params["ln2_a"], params["ln2_b"], eps)


if __name__ == "__main__":
    # Module hyper-parameters (globals in the original file) — small demo values.
    batch, seq = 2, 8
    hidden_size = 32
    multi_head = 4
    fc_size = 64
    eps = 1e-6

    key = jax.random.PRNGKey(0)
    keys = jax.random.split(key, 16)

    def w_init(k, out_dim, in_dim):
        return jax.random.normal(k, (out_dim, in_dim), jnp.float32) / jnp.sqrt(in_dim)

    def b_init(k, dim):
        return 0.1 * jax.random.normal(k, (dim,), jnp.float32)

    params = {
        "wq": w_init(keys[0], hidden_size, hidden_size), "bq": b_init(keys[1], hidden_size),
        "wk": w_init(keys[2], hidden_size, hidden_size), "bk": b_init(keys[3], hidden_size),
        "wv": w_init(keys[4], hidden_size, hidden_size), "bv": b_init(keys[5], hidden_size),
        "wm": w_init(keys[6], hidden_size, hidden_size), "bm": b_init(keys[7], hidden_size),
        "w1": w_init(keys[8], fc_size, hidden_size),     "fb1": b_init(keys[9], fc_size),
        "w2": w_init(keys[10], hidden_size, fc_size),    "fb2": b_init(keys[11], hidden_size),
        # LayerNorm params per __init__: a_2 = ones(size), b_2 = zeros(size)
        "ln1_a": jnp.ones((hidden_size,), jnp.float32),
        "ln1_b": jnp.zeros((hidden_size,), jnp.float32),
        "ln2_a": jnp.ones((hidden_size,), jnp.float32),
        "ln2_b": jnp.zeros((hidden_size,), jnp.float32),
    }

    x = jax.random.normal(keys[12], (batch, seq, hidden_size), jnp.float32)
    # Key-padding mask, torch-style shape (B, 1, 1, S); True == masked position.
    valid_len = jnp.array([seq, seq - 2])
    x_mask = (jnp.arange(seq)[None, :] >= valid_len[:, None]).reshape(batch, 1, 1, seq)

    out = sa_forward_pallas(x, x_mask, params, num_heads=multi_head, eps=eps)
    out = jax.block_until_ready(out)

    ref = sa_ref(x, x_mask, params, num_heads=multi_head, eps=eps)
    assert out.shape == x.shape and out.dtype == x.dtype
    err = float(jnp.max(jnp.abs(out - ref)))
    # f32 matmuls go through the MXU in both paths; allow small slack.
    assert err < 2e-2, f"mismatch vs reference: max abs err = {err}"
    print("KERNEL_OK")
</pallas_src>

<mosaic_0001>
module attributes {stable_mosaic.version = 11 : i64} {
  func.func @_sa_fused_kernel(%arg0: i32, %arg1: memref<1x8x32xf32, #tpu.memory_space<vmem>>, %arg2: memref<1x8x8xf32, #tpu.memory_space<vmem>>, %arg3: memref<4x32x8xf32, #tpu.memory_space<vmem>>, %arg4: memref<4x1x8xf32, #tpu.memory_space<vmem>>, %arg5: memref<4x32x8xf32, #tpu.memory_space<vmem>>, %arg6: memref<4x1x8xf32, #tpu.memory_space<vmem>>, %arg7: memref<4x32x8xf32, #tpu.memory_space<vmem>>, %arg8: memref<4x1x8xf32, #tpu.memory_space<vmem>>, %arg9: memref<4x8x32xf32, #tpu.memory_space<vmem>>, %arg10: memref<1x32xf32, #tpu.memory_space<vmem>>, %arg11: memref<1x32xf32, #tpu.memory_space<vmem>>, %arg12: memref<1x32xf32, #tpu.memory_space<vmem>>, %arg13: memref<32x64xf32, #tpu.memory_space<vmem>>, %arg14: memref<1x64xf32, #tpu.memory_space<vmem>>, %arg15: memref<64x32xf32, #tpu.memory_space<vmem>>, %arg16: memref<1x32xf32, #tpu.memory_space<vmem>>, %arg17: memref<1x32xf32, #tpu.memory_space<vmem>>, %arg18: memref<1x32xf32, #tpu.memory_space<vmem>>, %arg19: memref<1x8x32xf32, #tpu.memory_space<vmem>>) attributes {dimension_semantics = [#tpu.dimension_semantics<parallel>], iteration_bounds = array<i64: 2>, scalar_prefetch = 0 : i64, scratch_operands = 0 : i64, tpu.core_type = #tpu.core_type<tc>, window_params = [{transform_indices = @transform_0, window_bounds = array<i64: 1, 8, 32>}, {transform_indices = @transform_1, window_bounds = array<i64: 1, 8, 8>}, {pipeline_mode = #tpu.pipeline_mode<synchronous>, transform_indices = @transform_2, window_bounds = array<i64: 4, 32, 8>}, {pipeline_mode = #tpu.pipeline_mode<synchronous>, transform_indices = @transform_3, window_bounds = array<i64: 4, 1, 8>}, {pipeline_mode = #tpu.pipeline_mode<synchronous>, transform_indices = @transform_4, window_bounds = array<i64: 4, 32, 8>}, {pipeline_mode = #tpu.pipeline_mode<synchronous>, transform_indices = @transform_5, window_bounds = array<i64: 4, 1, 8>}, {pipeline_mode = #tpu.pipeline_mode<synchronous>, transform_indices = @transform_6, window_bounds = array<i64: 4, 32, 8>}, {pipeline_mode = #tpu.pipeline_mode<synchronous>, transform_indices = @transform_7, window_bounds = array<i64: 4, 1, 8>}, {pipeline_mode = #tpu.pipeline_mode<synchronous>, transform_indices = @transform_8, window_bounds = array<i64: 4, 8, 32>}, {pipeline_mode = #tpu.pipeline_mode<synchronous>, transform_indices = @transform_9, window_bounds = array<i64: 1, 32>}, {pipeline_mode = #tpu.pipeline_mode<synchronous>, transform_indices = @transform_10, window_bounds = array<i64: 1, 32>}, {pipeline_mode = #tpu.pipeline_mode<synchronous>, transform_indices = @transform_11, window_bounds = array<i64: 1, 32>}, {pipeline_mode = #tpu.pipeline_mode<synchronous>, transform_indices = @transform_12, window_bounds = array<i64: 32, 64>}, {pipeline_mode = #tpu.pipeline_mode<synchronous>, transform_indices = @transform_13, window_bounds = array<i64: 1, 64>}, {pipeline_mode = #tpu.pipeline_mode<synchronous>, transform_indices = @transform_14, window_bounds = array<i64: 64, 32>}, {pipeline_mode = #tpu.pipeline_mode<synchronous>, transform_indices = @transform_15, window_bounds = array<i64: 1, 32>}, {pipeline_mode = #tpu.pipeline_mode<synchronous>, transform_indices = @transform_16, window_bounds = array<i64: 1, 32>}, {pipeline_mode = #tpu.pipeline_mode<synchronous>, transform_indices = @transform_17, window_bounds = array<i64: 1, 32>}, {transform_indices = @transform_18, window_bounds = array<i64: 1, 8, 32>}]} {
    %c0 = arith.constant 0 : index
    %c0_0 = arith.constant 0 : index
    %c0_1 = arith.constant 0 : index
    %0 = vector.load %arg1[%c0, %c0_0, %c0_1] : memref<1x8x32xf32, #tpu.memory_space<vmem>>, vector<1x8x32xf32>
    %1 = vector.shape_cast %0 : vector<1x8x32xf32> to vector<8x32xf32>
    %c0_2 = arith.constant 0 : index
    %c0_3 = arith.constant 0 : index
    %c0_4 = arith.constant 0 : index
    %2 = vector.load %arg2[%c0_2, %c0_3, %c0_4] : memref<1x8x8xf32, #tpu.memory_space<vmem>>, vector<1x8x8xf32>
    %3 = vector.shape_cast %2 : vector<1x8x8xf32> to vector<8x8xf32>
    %c0_5 = arith.constant 0 : index
    %c0_6 = arith.constant 0 : index
    %c0_7 = arith.constant 0 : index
    %4 = vector.load %arg3[%c0_5, %c0_6, %c0_7] : memref<4x32x8xf32, #tpu.memory_space<vmem>>, vector<1x32x8xf32>
    %5 = vector.shape_cast %4 : vector<1x32x8xf32> to vector<32x8xf32>
    %cst = arith.constant dense<0.000000e+00> : vector<8x8xf32>
    %6 = tpu.matmul %1, %5, %cst {dimension_numbers = #tpu.dot_dimension_numbers<[1], [0], [0], [1], [0, 0, 1, 1], [], []>} : vector<8x32xf32>, vector<32x8xf32>, vector<8x8xf32> -> vector<8x8xf32>
    %c0_8 = arith.constant 0 : index
    %c0_9 = arith.constant 0 : index
    %c0_10 = arith.constant 0 : index
    %7 = vector.load %arg4[%c0_8, %c0_9, %c0_10] : memref<4x1x8xf32, #tpu.memory_space<vmem>>, vector<1x1x8xf32>
    %8 = vector.shape_cast %7 : vector<1x1x8xf32> to vector<1x8xf32>
    %9 = vector.broadcast %8 : vector<1x8xf32> to vector<8x8xf32>
    %10 = arith.addf %6, %9 : vector<8x8xf32>
    %c0_11 = arith.constant 0 : index
    %c0_12 = arith.constant 0 : index
    %c0_13 = arith.constant 0 : index
    %11 = vector.load %arg5[%c0_11, %c0_12, %c0_13] : memref<4x32x8xf32, #tpu.memory_space<vmem>>, vector<1x32x8xf32>
    %12 = vector.shape_cast %11 : vector<1x32x8xf32> to vector<32x8xf32>
    %cst_14 = arith.constant dense<0.000000e+00> : vector<8x8xf32>
    %13 = tpu.matmul %1, %12, %cst_14 {dimension_numbers = #tpu.dot_dimension_numbers<[1], [0], [0], [1], [0, 0, 1, 1], [], []>} : vector<8x32xf32>, vector<32x8xf32>, vector<8x8xf32> -> vector<8x8xf32>
    %c0_15 = arith.constant 0 : index
    %c0_16 = arith.constant 0 : index
    %c0_17 = arith.constant 0 : index
    %14 = vector.load %arg6[%c0_15, %c0_16, %c0_17] : memref<4x1x8xf32, #tpu.memory_space<vmem>>, vector<1x1x8xf32>
    %15 = vector.shape_cast %14 : vector<1x1x8xf32> to vector<1x8xf32>
    %16 = vector.broadcast %15 : vector<1x8xf32> to vector<8x8xf32>
    %17 = arith.addf %13, %16 : vector<8x8xf32>
    %c0_18 = arith.constant 0 : index
    %c0_19 = arith.constant 0 : index
    %c0_20 = arith.constant 0 : index
    %18 = vector.load %arg7[%c0_18, %c0_19, %c0_20] : memref<4x32x8xf32, #tpu.memory_space<vmem>>, vector<1x32x8xf32>
    %19 = vector.shape_cast %18 : vector<1x32x8xf32> to vector<32x8xf32>
    %cst_21 = arith.constant dense<0.000000e+00> : vector<8x8xf32>
    %20 = tpu.matmul %1, %19, %cst_21 {dimension_numbers = #tpu.dot_dimension_numbers<[1], [0], [0], [1], [0, 0, 1, 1], [], []>} : vector<8x32xf32>, vector<32x8xf32>, vector<8x8xf32> -> vector<8x8xf32>
    %c0_22 = arith.constant 0 : index
    %c0_23 = arith.constant 0 : index
    %c0_24 = arith.constant 0 : index
    %21 = vector.load %arg8[%c0_22, %c0_23, %c0_24] : memref<4x1x8xf32, #tpu.memory_space<vmem>>, vector<1x1x8xf32>
    %22 = vector.shape_cast %21 : vector<1x1x8xf32> to vector<1x8xf32>
    %23 = vector.broadcast %22 : vector<1x8xf32> to vector<8x8xf32>
    %24 = arith.addf %20, %23 : vector<8x8xf32>
    %cst_25 = arith.constant dense<0.000000e+00> : vector<8x8xf32>
    %25 = tpu.matmul %10, %17, %cst_25 {dimension_numbers = #tpu.dot_dimension_numbers<[1], [1], [0], [0], [0, 0, 1, 0], [], []>} : vector<8x8xf32>, vector<8x8xf32>, vector<8x8xf32> -> vector<8x8xf32>
    %cst_26 = arith.constant 0.353553385 : f32
    %26 = vector.broadcast %cst_26 : f32 to vector<8x8xf32>
    %27 = arith.mulf %25, %26 : vector<8x8xf32>
    %cst_27 = arith.constant 5.000000e-01 : f32
    %28 = vector.broadcast %cst_27 : f32 to vector<8x8xf32>
    %29 = arith.cmpf ogt, %3, %28 : vector<8x8xf32>
    %cst_28 = arith.constant -1.000000e+09 : f32
    %30 = vector.broadcast %cst_28 : f32 to vector<8x8xf32>
    %31 = arith.select %29, %30, %27 : vector<8x8xi1>, vector<8x8xf32>
    %cst_29 = arith.constant dense<0xFF800000> : vector<8xf32>
    %32 = vector.multi_reduction <maximumf>, %31, %cst_29 [1] : vector<8x8xf32> to vector<8xf32>
    %33 = vector.shape_cast %32 : vector<8xf32> to vector<8x1xf32>
    %34 = vector.broadcast %33 : vector<8x1xf32> to vector<8x8xf32>
    %35 = arith.subf %31, %34 : vector<8x8xf32>
    %36 = math.exp %35 : vector<8x8xf32>
    %cst_30 = arith.constant dense<0.000000e+00> : vector<8xf32>
    %37 = vector.multi_reduction <add>, %36, %cst_30 [1] : vector<8x8xf32> to vector<8xf32>
    %38 = vector.shape_cast %37 : vector<8xf32> to vector<8x1xf32>
    %39 = tpu.reciprocal %38 : vector<8x1xf32> -> vector<8x1xf32>
    %40 = vector.broadcast %39 : vector<8x1xf32> to vector<8x8xf32>
    %41 = arith.mulf %36, %40 : vector<8x8xf32>
    %cst_31 = arith.constant dense<0.000000e+00> : vector<8x8xf32>
    %42 = tpu.matmul %41, %24, %cst_31 {dimension_numbers = #tpu.dot_dimension_numbers<[1], [0], [0], [1], [0, 0, 1, 1], [], []>} : vector<8x8xf32>, vector<8x8xf32>, vector<8x8xf32> -> vector<8x8xf32>
    %c0_32 = arith.constant 0 : index
    %c0_33 = arith.constant 0 : index
    %c0_34 = arith.constant 0 : index
    %43 = vector.load %arg9[%c0_32, %c0_33, %c0_34] : memref<4x8x32xf32, #tpu.memory_space<vmem>>, vector<1x8x32xf32>
    %44 = vector.shape_cast %43 : vector<1x8x32xf32> to vector<8x32xf32>
    %cst_35 = arith.constant dense<0.000000e+00> : vector<8x32xf32>
    %45 = tpu.matmul %42, %44, %cst_35 {dimension_numbers = #tpu.dot_dimension_numbers<[1], [0], [0], [1], [0, 0, 1, 1], [], []>} : vector<8x8xf32>, vector<8x32xf32>, vector<8x32xf32> -> vector<8x32xf32>
    %c1 = arith.constant 1 : index
    %c0_36 = arith.constant 0 : index
    %c0_37 = arith.constant 0 : index
    %46 = vector.load %arg3[%c1, %c0_36, %c0_37] : memref<4x32x8xf32, #tpu.memory_space<vmem>>, vector<1x32x8xf32>
    %47 = vector.shape_cast %46 : vector<1x32x8xf32> to vector<32x8xf32>
    %cst_38 = arith.constant dense<0.000000e+00> : vector<8x8xf32>
    %48 = tpu.matmul %1, %47, %cst_38 {dimension_numbers = #tpu.dot_dimension_numbers<[1], [0], [0], [1], [0, 0, 1, 1], [], []>} : vector<8x32xf32>, vector<32x8xf32>, vector<8x8xf32> -> vector<8x8xf32>
    %c1_39 = arith.constant 1 : index
    %c0_40 = arith.constant 0 : index
    %c0_41 = arith.constant 0 : index
    %49 = vector.load %arg4[%c1_39, %c0_40, %c0_41] : memref<4x1x8xf32, #tpu.memory_space<vmem>>, vector<1x1x8xf32>
    %50 = vector.shape_cast %49 : vector<1x1x8xf32> to vector<1x8xf32>
    %51 = vector.broadcast %50 : vector<1x8xf32> to vector<8x8xf32>
    %52 = arith.addf %48, %51 : vector<8x8xf32>
    %c1_42 = arith.constant 1 : index
    %c0_43 = arith.constant 0 : index
    %c0_44 = arith.constant 0 : index
    %53 = vector.load %arg5[%c1_42, %c0_43, %c0_44] : memref<4x32x8xf32, #tpu.memory_space<vmem>>, vector<1x32x8xf32>
    %54 = vector.shape_cast %53 : vector<1x32x8xf32> to vector<32x8xf32>
    %cst_45 = arith.constant dense<0.000000e+00> : vector<8x8xf32>
    %55 = tpu.matmul %1, %54, %cst_45 {dimension_numbers = #tpu.dot_dimension_numbers<[1], [0], [0], [1], [0, 0, 1, 1], [], []>} : vector<8x32xf32>, vector<32x8xf32>, vector<8x8xf32> -> vector<8x8xf32>
    %c1_46 = arith.constant 1 : index
    %c0_47 = arith.constant 0 : index
    %c0_48 = arith.constant 0 : index
    %56 = vector.load %arg6[%c1_46, %c0_47, %c0_48] : memref<4x1x8xf32, #tpu.memory_space<vmem>>, vector<1x1x8xf32>
    %57 = vector.shape_cast %56 : vector<1x1x8xf32> to vector<1x8xf32>
    %58 = vector.broadcast %57 : vector<1x8xf32> to vector<8x8xf32>
    %59 = arith.addf %55, %58 : vector<8x8xf32>
    %c1_49 = arith.constant 1 : index
    %c0_50 = arith.constant 0 : index
    %c0_51 = arith.constant 0 : index
    %60 = vector.load %arg7[%c1_49, %c0_50, %c0_51] : memref<4x32x8xf32, #tpu.memory_space<vmem>>, vector<1x32x8xf32>
    %61 = vector.shape_cast %60 : vector<1x32x8xf32> to vector<32x8xf32>
    %cst_52 = arith.constant dense<0.000000e+00> : vector<8x8xf32>
    %62 = tpu.matmul %1, %61, %cst_52 {dimension_numbers = #tpu.dot_dimension_numbers<[1], [0], [0], [1], [0, 0, 1, 1], [], []>} : vector<8x32xf32>, vector<32x8xf32>, vector<8x8xf32> -> vector<8x8xf32>
    %c1_53 = arith.constant 1 : index
    %c0_54 = arith.constant 0 : index
    %c0_55 = arith.constant 0 : index
    %63 = vector.load %arg8[%c1_53, %c0_54, %c0_55] : memref<4x1x8xf32, #tpu.memory_space<vmem>>, vector<1x1x8xf32>
    %64 = vector.shape_cast %63 : vector<1x1x8xf32> to vector<1x8xf32>
    %65 = vector.broadcast %64 : vector<1x8xf32> to vector<8x8xf32>
    %66 = arith.addf %62, %65 : vector<8x8xf32>
    %cst_56 = arith.constant dense<0.000000e+00> : vector<8x8xf32>
    %67 = tpu.matmul %52, %59, %cst_56 {dimension_numbers = #tpu.dot_dimension_numbers<[1], [1], [0], [0], [0, 0, 1, 0], [], []>} : vector<8x8xf32>, vector<8x8xf32>, vector<8x8xf32> -> vector<8x8xf32>
    %cst_57 = arith.constant 0.353553385 : f32
    %68 = vector.broadcast %cst_57 : f32 to vector<8x8xf32>
    %69 = arith.mulf %67, %68 : vector<8x8xf32>
    %cst_58 = arith.constant 5.000000e-01 : f32
    %70 = vector.broadcast %cst_58 : f32 to vector<8x8xf32>
    %71 = arith.cmpf ogt, %3, %70 : vector<8x8xf32>
    %cst_59 = arith.constant -1.000000e+09 : f32
    %72 = vector.broadcast %cst_59 : f32 to vector<8x8xf32>
    %73 = arith.select %71, %72, %69 : vector<8x8xi1>, vector<8x8xf32>
    %cst_60 = arith.constant dense<0xFF800000> : vector<8xf32>
    %74 = vector.multi_reduction <maximumf>, %73, %cst_60 [1] : vector<8x8xf32> to vector<8xf32>
    %75 = vector.shape_cast %74 : vector<8xf32> to vector<8x1xf32>
    %76 = vector.broadcast %75 : vector<8x1xf32> to vector<8x8xf32>
    %77 = arith.subf %73, %76 : vector<8x8xf32>
    %78 = math.exp %77 : vector<8x8xf32>
    %cst_61 = arith.constant dense<0.000000e+00> : vector<8xf32>
    %79 = vector.multi_reduction <add>, %78, %cst_61 [1] : vector<8x8xf32> to vector<8xf32>
    %80 = vector.shape_cast %79 : vector<8xf32> to vector<8x1xf32>
    %81 = tpu.reciprocal %80 : vector<8x1xf32> -> vector<8x1xf32>
    %82 = vector.broadcast %81 : vector<8x1xf32> to vector<8x8xf32>
    %83 = arith.mulf %78, %82 : vector<8x8xf32>
    %cst_62 = arith.constant dense<0.000000e+00> : vector<8x8xf32>
    %84 = tpu.matmul %83, %66, %cst_62 {dimension_numbers = #tpu.dot_dimension_numbers<[1], [0], [0], [1], [0, 0, 1, 1], [], []>} : vector<8x8xf32>, vector<8x8xf32>, vector<8x8xf32> -> vector<8x8xf32>
    %c1_63 = arith.constant 1 : index
    %c0_64 = arith.constant 0 : index
    %c0_65 = arith.constant 0 : index
    %85 = vector.load %arg9[%c1_63, %c0_64, %c0_65] : memref<4x8x32xf32, #tpu.memory_space<vmem>>, vector<1x8x32xf32>
    %86 = vector.shape_cast %85 : vector<1x8x32xf32> to vector<8x32xf32>
    %cst_66 = arith.constant dense<0.000000e+00> : vector<8x32xf32>
    %87 = tpu.matmul %84, %86, %cst_66 {dimension_numbers = #tpu.dot_dimension_numbers<[1], [0], [0], [1], [0, 0, 1, 1], [], []>} : vector<8x8xf32>, vector<8x32xf32>, vector<8x32xf32> -> vector<8x32xf32>
    %88 = arith.addf %45, %87 : vector<8x32xf32>
    %c2 = arith.constant 2 : index
    %c0_67 = arith.constant 0 : index
    %c0_68 = arith.constant 0 : index
    %89 = vector.load %arg3[%c2, %c0_67, %c0_68] : memref<4x32x8xf32, #tpu.memory_space<vmem>>, vector<1x32x8xf32>
    %90 = vector.shape_cast %89 : vector<1x32x8xf32> to vector<32x8xf32>
    %cst_69 = arith.constant dense<0.000000e+00> : vector<8x8xf32>
    %91 = tpu.matmul %1, %90, %cst_69 {dimension_numbers = #tpu.dot_dimension_numbers<[1], [0], [0], [1], [0, 0, 1, 1], [], []>} : vector<8x32xf32>, vector<32x8xf32>, vector<8x8xf32> -> vector<8x8xf32>
    %c2_70 = arith.constant 2 : index
    %c0_71 = arith.constant 0 : index
    %c0_72 = arith.constant 0 : index
    %92 = vector.load %arg4[%c2_70, %c0_71, %c0_72] : memref<4x1x8xf32, #tpu.memory_space<vmem>>, vector<1x1x8xf32>
    %93 = vector.shape_cast %92 : vector<1x1x8xf32> to vector<1x8xf32>
    %94 = vector.broadcast %93 : vector<1x8xf32> to vector<8x8xf32>
    %95 = arith.addf %91, %94 : vector<8x8xf32>
    %c2_73 = arith.constant 2 : index
    %c0_74 = arith.constant 0 : index
    %c0_75 = arith.constant 0 : index
    %96 = vector.load %arg5[%c2_73, %c0_74, %c0_75] : memref<4x32x8xf32, #tpu.memory_space<vmem>>, vector<1x32x8xf32>
    %97 = vector.shape_cast %96 : vector<1x32x8xf32> to vector<32x8xf32>
    %cst_76 = arith.constant dense<0.000000e+00> : vector<8x8xf32>
    %98 = tpu.matmul %1, %97, %cst_76 {dimension_numbers = #tpu.dot_dimension_numbers<[1], [0], [0], [1], [0, 0, 1, 1], [], []>} : vector<8x32xf32>, vector<32x8xf32>, vector<8x8xf32> -> vector<8x8xf32>
    %c2_77 = arith.constant 2 : index
    %c0_78 = arith.constant 0 : index
    %c0_79 = arith.constant 0 : index
    %99 = vector.load %arg6[%c2_77, %c0_78, %c0_79] : memref<4x1x8xf32, #tpu.memory_space<vmem>>, vector<1x1x8xf32>
    %100 = vector.shape_cast %99 : vector<1x1x8xf32> to vector<1x8xf32>
    %101 = vector.broadcast %100 : vector<1x8xf32> to vector<8x8xf32>
    %102 = arith.addf %98, %101 : vector<8x8xf32>
    %c2_80 = arith.constant 2 : index
    %c0_81 = arith.constant 0 : index
    %c0_82 = arith.constant 0 : index
    %103 = vector.load %arg7[%c2_80, %c0_81, %c0_82] : memref<4x32x8xf32, #tpu.memory_space<vmem>>, vector<1x32x8xf32>
    %104 = vector.shape_cast %103 : vector<1x32x8xf32> to vector<32x8xf32>
    %cst_83 = arith.constant dense<0.000000e+00> : vector<8x8xf32>
    %105 = tpu.matmul %1, %104, %cst_83 {dimension_numbers = #tpu.dot_dimension_numbers<[1], [0], [0], [1], [0, 0, 1, 1], [], []>} : vector<8x32xf32>, vector<32x8xf32>, vector<8x8xf32> -> vector<8x8xf32>
    %c2_84 = arith.constant 2 : index
    %c0_85 = arith.constant 0 : index
    %c0_86 = arith.constant 0 : index
    %106 = vector.load %arg8[%c2_84, %c0_85, %c0_86] : memref<4x1x8xf32, #tpu.memory_space<vmem>>, vector<1x1x8xf32>
    %107 = vector.shape_cast %106 : vector<1x1x8xf32> to vector<1x8xf32>
    %108 = vector.broadcast %107 : vector<1x8xf32> to vector<8x8xf32>
    %109 = arith.addf %105, %108 : vector<8x8xf32>
    %cst_87 = arith.constant dense<0.000000e+00> : vector<8x8xf32>
    %110 = tpu.matmul %95, %102, %cst_87 {dimension_numbers = #tpu.dot_dimension_numbers<[1], [1], [0], [0], [0, 0, 1, 0], [], []>} : vector<8x8xf32>, vector<8x8xf32>, vector<8x8xf32> -> vector<8x8xf32>
    %cst_88 = arith.constant 0.353553385 : f32
    %111 = vector.broadcast %cst_88 : f32 to vector<8x8xf32>
    %112 = arith.mulf %110, %111 : vector<8x8xf32>
    %cst_89 = arith.constant 5.000000e-01 : f32
    %113 = vector.broadcast %cst_89 : f32 to vector<8x8xf32>
    %114 = arith.cmpf ogt, %3, %113 : vector<8x8xf32>
    %cst_90 = arith.constant -1.000000e+09 : f32
    %115 = vector.broadcast %cst_90 : f32 to vector<8x8xf32>
    %116 = arith.select %114, %115, %112 : vector<8x8xi1>, vector<8x8xf32>
    %cst_91 = arith.constant dense<0xFF800000> : vector<8xf32>
    %117 = vector.multi_reduction <maximumf>, %116, %cst_91 [1] : vector<8x8xf32> to vector<8xf32>
    %118 = vector.shape_cast %117 : vector<8xf32> to vector<8x1xf32>
    %119 = vector.broadcast %118 : vector<8x1xf32> to vector<8x8xf32>
    %120 = arith.subf %116, %119 : vector<8x8xf32>
    %121 = math.exp %120 : vector<8x8xf32>
    %cst_92 = arith.constant dense<0.000000e+00> : vector<8xf32>
    %122 = vector.multi_reduction <add>, %121, %cst_92 [1] : vector<8x8xf32> to vector<8xf32>
    %123 = vector.shape_cast %122 : vector<8xf32> to vector<8x1xf32>
    %124 = tpu.reciprocal %123 : vector<8x1xf32> -> vector<8x1xf32>
    %125 = vector.broadcast %124 : vector<8x1xf32> to vector<8x8xf32>
    %126 = arith.mulf %121, %125 : vector<8x8xf32>
    %cst_93 = arith.constant dense<0.000000e+00> : vector<8x8xf32>
    %127 = tpu.matmul %126, %109, %cst_93 {dimension_numbers = #tpu.dot_dimension_numbers<[1], [0], [0], [1], [0, 0, 1, 1], [], []>} : vector<8x8xf32>, vector<8x8xf32>, vector<8x8xf32> -> vector<8x8xf32>
    %c2_94 = arith.constant 2 : index
    %c0_95 = arith.constant 0 : index
    %c0_96 = arith.constant 0 : index
    %128 = vector.load %arg9[%c2_94, %c0_95, %c0_96] : memref<4x8x32xf32, #tpu.memory_space<vmem>>, vector<1x8x32xf32>
    %129 = vector.shape_cast %128 : vector<1x8x32xf32> to vector<8x32xf32>
    %cst_97 = arith.constant dense<0.000000e+00> : vector<8x32xf32>
    %130 = tpu.matmul %127, %129, %cst_97 {dimension_numbers = #tpu.dot_dimension_numbers<[1], [0], [0], [1], [0, 0, 1, 1], [], []>} : vector<8x8xf32>, vector<8x32xf32>, vector<8x32xf32> -> vector<8x32xf32>
    %131 = arith.addf %88, %130 : vector<8x32xf32>
    %c3 = arith.constant 3 : index
    %c0_98 = arith.constant 0 : index
    %c0_99 = arith.constant 0 : index
    %132 = vector.load %arg3[%c3, %c0_98, %c0_99] : memref<4x32x8xf32, #tpu.memory_space<vmem>>, vector<1x32x8xf32>
    %133 = vector.shape_cast %132 : vector<1x32x8xf32> to vector<32x8xf32>
    %cst_100 = arith.constant dense<0.000000e+00> : vector<8x8xf32>
    %134 = tpu.matmul %1, %133, %cst_100 {dimension_numbers = #tpu.dot_dimension_numbers<[1], [0], [0], [1], [0, 0, 1, 1], [], []>} : vector<8x32xf32>, vector<32x8xf32>, vector<8x8xf32> -> vector<8x8xf32>
    %c3_101 = arith.constant 3 : index
    %c0_102 = arith.constant 0 : index
    %c0_103 = arith.constant 0 : index
    %135 = vector.load %arg4[%c3_101, %c0_102, %c0_103] : memref<4x1x8xf32, #tpu.memory_space<vmem>>, vector<1x1x8xf32>
    %136 = vector.shape_cast %135 : vector<1x1x8xf32> to vector<1x8xf32>
    %137 = vector.broadcast %136 : vector<1x8xf32> to vector<8x8xf32>
    %138 = arith.addf %134, %137 : vector<8x8xf32>
    %c3_104 = arith.constant 3 : index
    %c0_105 = arith.constant 0 : index
    %c0_106 = arith.constant 0 : index
    %139 = vector.load %arg5[%c3_104, %c0_105, %c0_106] : memref<4x32x8xf32, #tpu.memory_space<vmem>>, vector<1x32x8xf32>
    %140 = vector.shape_cast %139 : vector<1x32x8xf32> to vector<32x8xf32>
    %cst_107 = arith.constant dense<0.000000e+00> : vector<8x8xf32>
    %141 = tpu.matmul %1, %140, %cst_107 {dimension_numbers = #tpu.dot_dimension_numbers<[1], [0], [0], [1], [0, 0, 1, 1], [], []>} : vector<8x32xf32>, vector<32x8xf32>, vector<8x8xf32> -> vector<8x8xf32>
    %c3_108 = arith.constant 3 : index
    %c0_109 = arith.constant 0 : index
    %c0_110 = arith.constant 0 : index
    %142 = vector.load %arg6[%c3_108, %c0_109, %c0_110] : memref<4x1x8xf32, #tpu.memory_space<vmem>>, vector<1x1x8xf32>
    %143 = vector.shape_cast %142 : vector<1x1x8xf32> to vector<1x8xf32>
    %144 = vector.broadcast %143 : vector<1x8xf32> to vector<8x8xf32>
    %145 = arith.addf %141, %144 : vector<8x8xf32>
    %c3_111 = arith.constant 3 : index
    %c0_112 = arith.constant 0 : index
    %c0_113 = arith.constant 0 : index
    %146 = vector.load %arg7[%c3_111, %c0_112, %c0_113] : memref<4x32x8xf32, #tpu.memory_space<vmem>>, vector<1x32x8xf32>
    %147 = vector.shape_cast %146 : vector<1x32x8xf32> to vector<32x8xf32>
    %cst_114 = arith.constant dense<0.000000e+00> : vector<8x8xf32>
    %148 = tpu.matmul %1, %147, %cst_114 {dimension_numbers = #tpu.dot_dimension_numbers<[1], [0], [0], [1], [0, 0, 1, 1], [], []>} : vector<8x32xf32>, vector<32x8xf32>, vector<8x8xf32> -> vector<8x8xf32>
    %c3_115 = arith.constant 3 : index
    %c0_116 = arith.constant 0 : index
    %c0_117 = arith.constant 0 : index
    %149 = vector.load %arg8[%c3_115, %c0_116, %c0_117] : memref<4x1x8xf32, #tpu.memory_space<vmem>>, vector<1x1x8xf32>
    %150 = vector.shape_cast %149 : vector<1x1x8xf32> to vector<1x8xf32>
    %151 = vector.broadcast %150 : vector<1x8xf32> to vector<8x8xf32>
    %152 = arith.addf %148, %151 : vector<8x8xf32>
    %cst_118 = arith.constant dense<0.000000e+00> : vector<8x8xf32>
    %153 = tpu.matmul %138, %145, %cst_118 {dimension_numbers = #tpu.dot_dimension_numbers<[1], [1], [0], [0], [0, 0, 1, 0], [], []>} : vector<8x8xf32>, vector<8x8xf32>, vector<8x8xf32> -> vector<8x8xf32>
    %cst_119 = arith.constant 0.353553385 : f32
    %154 = vector.broadcast %cst_119 : f32 to vector<8x8xf32>
    %155 = arith.mulf %153, %154 : vector<8x8xf32>
    %cst_120 = arith.constant 5.000000e-01 : f32
    %156 = vector.broadcast %cst_120 : f32 to vector<8x8xf32>
    %157 = arith.cmpf ogt, %3, %156 : vector<8x8xf32>
    %cst_121 = arith.constant -1.000000e+09 : f32
    %158 = vector.broadcast %cst_121 : f32 to vector<8x8xf32>
    %159 = arith.select %157, %158, %155 : vector<8x8xi1>, vector<8x8xf32>
    %cst_122 = arith.constant dense<0xFF800000> : vector<8xf32>
    %160 = vector.multi_reduction <maximumf>, %159, %cst_122 [1] : vector<8x8xf32> to vector<8xf32>
    %161 = vector.shape_cast %160 : vector<8xf32> to vector<8x1xf32>
    %162 = vector.broadcast %161 : vector<8x1xf32> to vector<8x8xf32>
    %163 = arith.subf %159, %162 : vector<8x8xf32>
    %164 = math.exp %163 : vector<8x8xf32>
    %cst_123 = arith.constant dense<0.000000e+00> : vector<8xf32>
    %165 = vector.multi_reduction <add>, %164, %cst_123 [1] : vector<8x8xf32> to vector<8xf32>
    %166 = vector.shape_cast %165 : vector<8xf32> to vector<8x1xf32>
    %167 = tpu.reciprocal %166 : vector<8x1xf32> -> vector<8x1xf32>
    %168 = vector.broadcast %167 : vector<8x1xf32> to vector<8x8xf32>
    %169 = arith.mulf %164, %168 : vector<8x8xf32>
    %cst_124 = arith.constant dense<0.000000e+00> : vector<8x8xf32>
    %170 = tpu.matmul %169, %152, %cst_124 {dimension_numbers = #tpu.dot_dimension_numbers<[1], [0], [0], [1], [0, 0, 1, 1], [], []>} : vector<8x8xf32>, vector<8x8xf32>, vector<8x8xf32> -> vector<8x8xf32>
    %c3_125 = arith.constant 3 : index
    %c0_126 = arith.constant 0 : index
    %c0_127 = arith.constant 0 : index
    %171 = vector.load %arg9[%c3_125, %c0_126, %c0_127] : memref<4x8x32xf32, #tpu.memory_space<vmem>>, vector<1x8x32xf32>
    %172 = vector.shape_cast %171 : vector<1x8x32xf32> to vector<8x32xf32>
    %cst_128 = arith.constant dense<0.000000e+00> : vector<8x32xf32>
    %173 = tpu.matmul %170, %172, %cst_128 {dimension_numbers = #tpu.dot_dimension_numbers<[1], [0], [0], [1], [0, 0, 1, 1], [], []>} : vector<8x8xf32>, vector<8x32xf32>, vector<8x32xf32> -> vector<8x32xf32>
    %174 = arith.addf %131, %173 : vector<8x32xf32>
    %c0_129 = arith.constant 0 : index
    %c0_130 = arith.constant 0 : index
    %175 = vector.load %arg10[%c0_129, %c0_130] : memref<1x32xf32, #tpu.memory_space<vmem>>, vector<1x32xf32>
    %176 = vector.broadcast %175 : vector<1x32xf32> to vector<8x32xf32>
    %177 = arith.addf %174, %176 : vector<8x32xf32>
    %178 = arith.addf %1, %177 : vector<8x32xf32>
    %c0_131 = arith.constant 0 : index
    %c0_132 = arith.constant 0 : index
    %179 = vector.load %arg11[%c0_131, %c0_132] : memref<1x32xf32, #tpu.memory_space<vmem>>, vector<1x32xf32>
    %c0_133 = arith.constant 0 : index
    %c0_134 = arith.constant 0 : index
    %180 = vector.load %arg12[%c0_133, %c0_134] : memref<1x32xf32, #tpu.memory_space<vmem>>, vector<1x32xf32>
    %cst_135 = arith.constant dense<0.000000e+00> : vector<8xf32>
    %181 = vector.multi_reduction <add>, %178, %cst_135 [1] : vector<8x32xf32> to vector<8xf32>
    %182 = vector.shape_cast %181 : vector<8xf32> to vector<8x1xf32>
    %cst_136 = arith.constant 3.200000e+01 : f32
    %183 = vector.broadcast %cst_136 : f32 to vector<8x1xf32>
    %184 = arith.divf %182, %183 : vector<8x1xf32>
    %185 = vector.broadcast %184 : vector<8x1xf32> to vector<8x32xf32>
    %186 = arith.subf %178, %185 : vector<8x32xf32>
    %187 = arith.mulf %186, %186 : vector<8x32xf32>
    %cst_137 = arith.constant dense<0.000000e+00> : vector<8xf32>
    %188 = vector.multi_reduction <add>, %187, %cst_137 [1] : vector<8x32xf32> to vector<8xf32>
    %189 = vector.shape_cast %188 : vector<8xf32> to vector<8x1xf32>
    %cst_138 = arith.constant 0.0322580636 : f32
    %190 = vector.broadcast %cst_138 : f32 to vector<8x1xf32>
    %191 = arith.mulf %189, %190 : vector<8x1xf32>
    %192 = math.sqrt %191 : vector<8x1xf32>
    %cst_139 = arith.constant 9.99999997E-7 : f32
    %193 = vector.broadcast %cst_139 : f32 to vector<8x1xf32>
    %194 = arith.addf %192, %193 : vector<8x1xf32>
    %195 = tpu.reciprocal %194 : vector<8x1xf32> -> vector<8x1xf32>
    %196 = vector.broadcast %195 : vector<8x1xf32> to vector<8x32xf32>
    %197 = arith.mulf %186, %196 : vector<8x32xf32>
    %198 = vector.broadcast %179 : vector<1x32xf32> to vector<8x32xf32>
    %199 = arith.mulf %198, %197 : vector<8x32xf32>
    %200 = vector.broadcast %180 : vector<1x32xf32> to vector<8x32xf32>
    %201 = arith.addf %199, %200 : vector<8x32xf32>
    %c0_140 = arith.constant 0 : index
    %c0_141 = arith.constant 0 : index
    %202 = vector.load %arg13[%c0_140, %c0_141] : memref<32x64xf32, #tpu.memory_space<vmem>>, vector<32x64xf32>
    %cst_142 = arith.constant dense<0.000000e+00> : vector<8x64xf32>
    %203 = tpu.matmul %201, %202, %cst_142 {dimension_numbers = #tpu.dot_dimension_numbers<[1], [0], [0], [1], [0, 0, 1, 1], [], []>} : vector<8x32xf32>, vector<32x64xf32>, vector<8x64xf32> -> vector<8x64xf32>
    %c0_143 = arith.constant 0 : index
    %c0_144 = arith.constant 0 : index
    %204 = vector.load %arg14[%c0_143, %c0_144] : memref<1x64xf32, #tpu.memory_space<vmem>>, vector<1x64xf32>
    %205 = vector.broadcast %204 : vector<1x64xf32> to vector<8x64xf32>
    %206 = arith.addf %203, %205 : vector<8x64xf32>
    %cst_145 = arith.constant 0.000000e+00 : f32
    %207 = vector.broadcast %cst_145 : f32 to vector<8x64xf32>
    %208 = arith.maximumf %206, %207 : vector<8x64xf32>
    %c0_146 = arith.constant 0 : index
    %c0_147 = arith.constant 0 : index
    %209 = vector.load %arg15[%c0_146, %c0_147] : memref<64x32xf32, #tpu.memory_space<vmem>>, vector<64x32xf32>
    %cst_148 = arith.constant dense<0.000000e+00> : vector<8x32xf32>
    %210 = tpu.matmul %208, %209, %cst_148 {dimension_numbers = #tpu.dot_dimension_numbers<[1], [0], [0], [1], [0, 0, 1, 1], [], []>} : vector<8x64xf32>, vector<64x32xf32>, vector<8x32xf32> -> vector<8x32xf32>
    %c0_149 = arith.constant 0 : index
    %c0_150 = arith.constant 0 : index
    %211 = vector.load %arg16[%c0_149, %c0_150] : memref<1x32xf32, #tpu.memory_space<vmem>>, vector<1x32xf32>
    %212 = vector.broadcast %211 : vector<1x32xf32> to vector<8x32xf32>
    %213 = arith.addf %210, %212 : vector<8x32xf32>
    %214 = arith.addf %201, %213 : vector<8x32xf32>
    %c0_151 = arith.constant 0 : index
    %c0_152 = arith.constant 0 : index
    %215 = vector.load %arg17[%c0_151, %c0_152] : memref<1x32xf32, #tpu.memory_space<vmem>>, vector<1x32xf32>
    %c0_153 = arith.constant 0 : index
    %c0_154 = arith.constant 0 : index
    %216 = vector.load %arg18[%c0_153, %c0_154] : memref<1x32xf32, #tpu.memory_space<vmem>>, vector<1x32xf32>
    %cst_155 = arith.constant dense<0.000000e+00> : vector<8xf32>
    %217 = vector.multi_reduction <add>, %214, %cst_155 [1] : vector<8x32xf32> to vector<8xf32>
    %218 = vector.shape_cast %217 : vector<8xf32> to vector<8x1xf32>
    %cst_156 = arith.constant 3.200000e+01 : f32
    %219 = vector.broadcast %cst_156 : f32 to vector<8x1xf32>
    %220 = arith.divf %218, %219 : vector<8x1xf32>
    %221 = vector.broadcast %220 : vector<8x1xf32> to vector<8x32xf32>
    %222 = arith.subf %214, %221 : vector<8x32xf32>
    %223 = arith.mulf %222, %222 : vector<8x32xf32>
    %cst_157 = arith.constant dense<0.000000e+00> : vector<8xf32>
    %224 = vector.multi_reduction <add>, %223, %cst_157 [1] : vector<8x32xf32> to vector<8xf32>
    %225 = vector.shape_cast %224 : vector<8xf32> to vector<8x1xf32>
    %cst_158 = arith.constant 0.0322580636 : f32
    %226 = vector.broadcast %cst_158 : f32 to vector<8x1xf32>
    %227 = arith.mulf %225, %226 : vector<8x1xf32>
    %228 = math.sqrt %227 : vector<8x1xf32>
    %cst_159 = arith.constant 9.99999997E-7 : f32
    %229 = vector.broadcast %cst_159 : f32 to vector<8x1xf32>
    %230 = arith.addf %228, %229 : vector<8x1xf32>
    %231 = tpu.reciprocal %230 : vector<8x1xf32> -> vector<8x1xf32>
    %232 = vector.broadcast %231 : vector<8x1xf32> to vector<8x32xf32>
    %233 = arith.mulf %222, %232 : vector<8x32xf32>
    %234 = vector.broadcast %215 : vector<1x32xf32> to vector<8x32xf32>
    %235 = arith.mulf %234, %233 : vector<8x32xf32>
    %236 = vector.broadcast %216 : vector<1x32xf32> to vector<8x32xf32>
    %237 = arith.addf %235, %236 : vector<8x32xf32>
    %c0_160 = arith.constant 0 : index
    %c0_161 = arith.constant 0 : index
    %c0_162 = arith.constant 0 : index
    %238 = vector.load %arg19[%c0_160, %c0_161, %c0_162] : memref<1x8x32xf32, #tpu.memory_space<vmem>>, vector<1x8x32xf32>
    %239 = vector.shape_cast %238 : vector<1x8x32xf32> to vector<8x32xf32>
    %240 = vector.shape_cast %237 : vector<8x32xf32> to vector<1x8x32xf32>
    tpu.vector_store %arg19[%c0_160, %c0_161, %c0_162], %240 {strides = array<i32>} : memref<1x8x32xf32, #tpu.memory_space<vmem>>, vector<1x8x32xf32>,
    return
  }
  func.func @transform_0(%arg0: i32) -> (i32, i32, i32) {
    %c0_i32 = arith.constant 0 : i32
    %c0_i32_0 = arith.constant 0 : i32
    %c0_i32_1 = arith.constant 0 : i32
    return %arg0, %c0_i32, %c0_i32_0 : i32, i32, i32
  }
  func.func @transform_1(%arg0: i32) -> (i32, i32, i32) {
    %c0_i32 = arith.constant 0 : i32
    %c0_i32_0 = arith.constant 0 : i32
    %c0_i32_1 = arith.constant 0 : i32
    return %arg0, %c0_i32, %c0_i32_0 : i32, i32, i32
  }
  func.func @transform_2(%arg0: i32) -> (i32, i32, i32) {
    %c0_i32 = arith.constant 0 : i32
    %c0_i32_0 = arith.constant 0 : i32
    %c0_i32_1 = arith.constant 0 : i32
    %c0_i32_2 = arith.constant 0 : i32
    return %c0_i32, %c0_i32_0, %c0_i32_1 : i32, i32, i32
  }
  func.func @transform_3(%arg0: i32) -> (i32, i32, i32) {
    %c0_i32 = arith.constant 0 : i32
    %c0_i32_0 = arith.constant 0 : i32
    %c0_i32_1 = arith.constant 0 : i32
    %c0_i32_2 = arith.constant 0 : i32
    return %c0_i32, %c0_i32_0, %c0_i32_1 : i32, i32, i32
  }
  func.func @transform_4(%arg0: i32) -> (i32, i32, i32) {
    %c0_i32 = arith.constant 0 : i32
    %c0_i32_0 = arith.constant 0 : i32
    %c0_i32_1 = arith.constant 0 : i32
    %c0_i32_2 = arith.constant 0 : i32
    return %c0_i32, %c0_i32_0, %c0_i32_1 : i32, i32, i32
  }
  func.func @transform_5(%arg0: i32) -> (i32, i32, i32) {
    %c0_i32 = arith.constant 0 : i32
    %c0_i32_0 = arith.constant 0 : i32
    %c0_i32_1 = arith.constant 0 : i32
    %c0_i32_2 = arith.constant 0 : i32
    return %c0_i32, %c0_i32_0, %c0_i32_1 : i32, i32, i32
  }
  func.func @transform_6(%arg0: i32) -> (i32, i32, i32) {
    %c0_i32 = arith.constant 0 : i32
    %c0_i32_0 = arith.constant 0 : i32
    %c0_i32_1 = arith.constant 0 : i32
    %c0_i32_2 = arith.constant 0 : i32
    return %c0_i32, %c0_i32_0, %c0_i32_1 : i32, i32, i32
  }
  func.func @transform_7(%arg0: i32) -> (i32, i32, i32) {
    %c0_i32 = arith.constant 0 : i32
    %c0_i32_0 = arith.constant 0 : i32
    %c0_i32_1 = arith.constant 0 : i32
    %c0_i32_2 = arith.constant 0 : i32
    return %c0_i32, %c0_i32_0, %c0_i32_1 : i32, i32, i32
  }
  func.func @transform_8(%arg0: i32) -> (i32, i32, i32) {
    %c0_i32 = arith.constant 0 : i32
    %c0_i32_0 = arith.constant 0 : i32
    %c0_i32_1 = arith.constant 0 : i32
    %c0_i32_2 = arith.constant 0 : i32
    return %c0_i32, %c0_i32_0, %c0_i32_1 : i32, i32, i32
  }
  func.func @transform_9(%arg0: i32) -> (i32, i32) {
    %c0_i32 = arith.constant 0 : i32
    %c0_i32_0 = arith.constant 0 : i32
    %c0_i32_1 = arith.constant 0 : i32
    return %c0_i32, %c0_i32_0 : i32, i32
  }
  func.func @transform_10(%arg0: i32) -> (i32, i32) {
    %c0_i32 = arith.constant 0 : i32
    %c0_i32_0 = arith.constant 0 : i32
    %c0_i32_1 = arith.constant 0 : i32
    return %c0_i32, %c0_i32_0 : i32, i32
  }
  func.func @transform_11(%arg0: i32) -> (i32, i32) {
    %c0_i32 = arith.constant 0 : i32
    %c0_i32_0 = arith.constant 0 : i32
    %c0_i32_1 = arith.constant 0 : i32
    return %c0_i32, %c0_i32_0 : i32, i32
  }
  func.func @transform_12(%arg0: i32) -> (i32, i32) {
    %c0_i32 = arith.constant 0 : i32
    %c0_i32_0 = arith.constant 0 : i32
    %c0_i32_1 = arith.constant 0 : i32
    return %c0_i32, %c0_i32_0 : i32, i32
  }
  func.func @transform_13(%arg0: i32) -> (i32, i32) {
    %c0_i32 = arith.constant 0 : i32
    %c0_i32_0 = arith.constant 0 : i32
    %c0_i32_1 = arith.constant 0 : i32
    return %c0_i32, %c0_i32_0 : i32, i32
  }
  func.func @transform_14(%arg0: i32) -> (i32, i32) {
    %c0_i32 = arith.constant 0 : i32
    %c0_i32_0 = arith.constant 0 : i32
    %c0_i32_1 = arith.constant 0 : i32
    return %c0_i32, %c0_i32_0 : i32, i32
  }
  func.func @transform_15(%arg0: i32) -> (i32, i32) {
    %c0_i32 = arith.constant 0 : i32
    %c0_i32_0 = arith.constant 0 : i32
    %c0_i32_1 = arith.constant 0 : i32
    return %c0_i32, %c0_i32_0 : i32, i32
  }
  func.func @transform_16(%arg0: i32) -> (i32, i32) {
    %c0_i32 = arith.constant 0 : i32
    %c0_i32_0 = arith.constant 0 : i32
    %c0_i32_1 = arith.constant 0 : i32
    return %c0_i32, %c0_i32_0 : i32, i32
  }
  func.func @transform_17(%arg0: i32) -> (i32, i32) {
    %c0_i32 = arith.constant 0 : i32
    %c0_i32_0 = arith.constant 0 : i32
    %c0_i32_1 = arith.constant 0 : i32
    return %c0_i32, %c0_i32_0 : i32, i32
  }
  func.func @transform_18(%arg0: i32) -> (i32, i32, i32) {
    %c0_i32 = arith.constant 0 : i32
    %c0_i32_0 = arith.constant 0 : i32
    %c0_i32_1 = arith.constant 0 : i32
    return %arg0, %c0_i32, %c0_i32_0 : i32, i32, i32
  }
}

</mosaic_0001>

<bundles_post_ra>
// kernel: tpu_custom_call.1
= control target key start
LH: loop header
LB: loop body
LE: loop exit
PB: predicated region body
PF: predicated region fallthrough
CT: control target
= control target key end

     0   :  { %s2366_s0 = inlined_call_operand.vmem [shape: f32[2,8,32], index: 0, kind: input, shape index: {}]   ;;  %s2367_s1 = inlined_call_operand.vmem [shape: f32[2,8,8], index: 1, kind: input, shape index: {}]   ;;  %s2368_s2 = inlined_call_operand.vmem [shape: f32[4,32,8], index: 2, kind: input, shape index: {}]   ;;  %s2369_s3 = inlined_call_operand.vmem [shape: f32[4,1,8], index: 3, kind: input, shape index: {}]   ;;  %s2370_s4 = inlined_call_operand.vmem [shape: f32[4,32,8], index: 4, kind: input, shape index: {}]   ;;  %s2371_s5 = inlined_call_operand.vmem [shape: f32[4,1,8], index: 5, kind: input, shape index: {}]   ;;  %s2372_s6 = inlined_call_operand.vmem [shape: f32[4,32,8], index: 6, kind: input, shape index: {}]   ;;  %s2373_s7 = inlined_call_operand.vmem [shape: f32[4,1,8], index: 7, kind: input, shape index: {}]   ;;  %s2374_s8 = inlined_call_operand.vmem [shape: f32[4,8,32], index: 8, kind: input, shape index: {}]   ;;  %s2375_s9 = inlined_call_operand.vmem [shape: f32[1,32], index: 9, kind: input, shape index: {}]   ;;  %s2376_s10 = inlined_call_operand.vmem [shape: f32[1,32], index: 10, kind: input, shape index: {}]   ;;  %s2377_s11 = inlined_call_operand.vmem [shape: f32[1,32], index: 11, kind: input, shape index: {}]   ;;  %s2378_s12 = inlined_call_operand.vmem [shape: f32[32,64], index: 12, kind: input, shape index: {}]   ;;  %s2379_s13 = inlined_call_operand.vmem [shape: f32[1,64], index: 13, kind: input, shape index: {}]   ;;  %s2380_s14 = inlined_call_operand.vmem [shape: f32[64,32], index: 14, kind: input, shape index: {}]   ;;  %s2381_s15 = inlined_call_operand.vmem [shape: f32[1,32], index: 15, kind: input, shape index: {}]   ;;  %s2382_s16 = inlined_call_operand.vmem [shape: f32[1,32], index: 16, kind: input, shape index: {}]   ;;  %s2383_s17 = inlined_call_operand.vmem [shape: f32[1,32], index: 17, kind: input, shape index: {}]   ;;  %s2384_s18 = inlined_call_operand.hbm [shape: f32[2,8,32], index: 18, kind: output, shape index: {}]  }
   0x1   :  { %2392 = sst [smem:[#allocation11_spill]] %s2366_s0 }
   0x2   :  { %2393 = sst [smem:[#allocation12_spill]] %s2367_s1 }
   0x3   :  { %2394 = sst [smem:[#allocation13_spill]] %s2368_s2 }
   0x4   :  { %2395 = sst [smem:[#allocation14_spill]] %s2369_s3 }
   0x5   :  { %2396 = sst [smem:[#allocation15_spill]] %s2383_s17 }
   0x6   :  { %23 = vsyncpa [#allocation3], 0 }
   0x7   :  { %25 = vsyncpa [#allocation3 + $0x1], 0  ;;  %s1951_s27 = smov 0   ;;  %s1953_s28 = smov 0  }
   0x8   :  { %s1955_s29 = smov 0   ;;  %s1957_s30 = smov 0  }
   0x9 LB: > { %2397 = sst [smem:[#allocation5_spill]] %s1841_s27  ;;  %s1972_s0 = sadd.s32 4294967295, %s1853_s30   ;;  %s1853_s30 = sphi %s1957_s30, %s2413_s30   ;;  %s1849_s29 = sphi %s1955_s29, %s2415_s29   ;;  %s1845_s28 = sphi %s1953_s28, %s2417_s28   ;;  %s1841_s27 = sphi %s1951_s27, %s2416_s27  }
   0xa   : > { %2398 = sst [smem:[#allocation6_spill]] %s1849_s29  ;;  %s1617_s19 = sadd.s32 4294967294, %s1853_s30  }
   0xb   : > { %2399 = sst [smem:[#allocation7_spill]] %s1853_s30  ;;  %s1976_s1 = sadd.s32 1, %s1853_s30  }
   0xc   : > { %2400 = sst [smem:[#allocation8_spill]] %s1976_s1  ;;  %s426_s20 = sadd.s32 1, %s1849_s29 }
   0xd   : > { %s423_s21 = ssub.s32 %s1853_s30, %s1976_s1  ;;  %p436_p0 = scmp.ne.s32.totalorder %s1849_s29, %s1845_s28 }
   0xe   : > { %p424_p1 = scmp.eq.s32.totalorder %s423_s21, 0  ;;  %p437_p2 = scmp.eq.s32.totalorder %s1972_s0, 1 }
   0xf   : > { %p442_p3 = scmp.ne.s32.totalorder %s1845_s28, %s1841_s27  ;;  %p443_p4 = scmp.eq.s32.totalorder %s1617_s19, 1 }
  0x10   : > { %s1987_s22 = scalar_select %p424_p1, %s1849_s29, %s426_s20  }
  0x11   : > { %p1989_p5 = por %p437_p2, %p436_p0  ;;  %p1993_p6 = por %p443_p4, %p442_p3 }
  0x12   : > { %2401 = sst [smem:[#allocation9_spill]] %s1987_s22  ;;  %p1620_p7 = scmp.ge.s32.totalorder %s1853_s30, 1 }
  0x13   : > { %s2403_s23 = scalar_select %p1993_p6, 1, 0 }
  0x14   : > { %p523_p8 = scmp.lt.s32.totalorder %s1853_s30, 3 }
  0x15   : > { %2404 = sst [smem:[#allocation10_spill]] %s2403_s23 }
  0x16   : > { %p524_p9 = pnand %p1620_p7, %p523_p8 }
  0x17   : > { %s2405_s26 = sld [smem:[#allocation13_spill]] (!%p524_p9)  ;;  %p580_p10 = scmp.lt.s32.totalorder (!%p524_p9), %s1972_s0, 1 }
  0x18   : > { %527 = sbr.rel (%p524_p9) target bundleno = 3162 (0xc5a), region = 92  ;;  %s2406_s30 = sld [smem:[#allocation11_spill]] (!%p524_p9) }
  0x19   : > { %s2407_s3 = sld [smem:[#allocation14_spill]] (!%p524_p9)  ;;  %s1703_s1 = sshll.u32 (!%p524_p9), %s1972_s0, 3 }
  0x1a   : > { %s2408_s21 = sld [smem:[#allocation12_spill]] (!%p524_p9) }
  0x1d   : > { %v593_v0 = vld [vmem:[%s2405_s26 + $0x18] sm:$0xff]  ;;  %v592_v1 = vld [vmem:[%s2405_s26 + $0x10] sm:$0xff]  ;;  %v591_v2 = vld [vmem:[%s2405_s26 + $0x8] sm:$0xff]  ;;  %s2010_s29 = scalar_select %p580_p10, %s1972_s0, 1  ;;  %vm598_vm0 = vcmask 261120   ;;  %vm678_vm1 = vcmask 64512  }
  0x1e   : > { %614 = vmatpush.msra.mxu1 %v593_v0  ;;  %v590_v3 = vld [vmem:[%s2405_s26] sm:$0xff]  ;;  %v625_v4 = vld [vmem:[%s2370_s4 + $0x18] sm:$0xff]  ;;  %v624_v6 = vld [vmem:[%s2370_s4 + $0x10] sm:$0xff]  ;;  %s2409_s0 = sld [smem:[#allocation15_spill]] }
  0x1f   : > { %s1622_s24 = sshll.u32 %s2010_s29, 3  ;;  %v623_v7 = vld [vmem:[%s2370_s4 + $0x8] sm:$0xff]  ;;  %v622_v8 = vld [vmem:[%s2370_s4] sm:$0xff]  ;;  %v653_v20 = vld [vmem:[%s2372_s6 + $0x18] sm:$0xff] }
  0x20   : > { %615 = vmatpush.msra.mxu1 %v592_v1  ;;  %s583_s22 = scalar_lea.vmem %s2406_s30, %s1622_s24  ;;  %v1747_v10 = vld [vmem:[%s2371_s5] ss:$0 sm:$0xff]  ;;  %s587_s29 = scalar_lea.vmem %s2408_s21, %s1622_s24  ;;  %v652_v21 = vld [vmem:[%s2372_s6 + $0x10] sm:$0xff]  ;;  %670 = vmatpush.msra.mxu2 %v653_v20  ;;  %v651_v22 = vld [vmem:[%s2372_s6 + $0x8] sm:$0xff] }
  0x21   : > { %v2022_v5 = vld [vmem:[%s583_s22] sm:$0xff]  ;;  %v1639_v24 = vld [vmem:[%s2370_s4 + $0x38] sm:$0xff]  ;;  %v1638_v25 = vld [vmem:[%s2370_s4 + $0x30] sm:$0xff]  ;;  %s577_s21 = sand.u32 1, %s1845_s28   ;;  %s1541_s30 = scalar_lea.hbm %s2384_s18, %s1703_s1 }
  0x22   : > { %616 = vmatpush.msra.mxu1 %v591_v2  ;;  %v1746_v11 = vld [vmem:[%s2407_s3] ss:$0 sm:$0xff]  ;;  %671 = vmatpush.msra.mxu2 %v652_v21  ;;  %v1633_v26 = vld [vmem:[%s2405_s26 + $0x38] sm:$0xff]  ;;  %v1632_v27 = vld [vmem:[%s2405_s26 + $0x30] sm:$0xff]  ;;  %s1531_s27 = scalar_lea.sflag [#allocation3], %s577_s21 }
  0x23   : > { %v2048_v15 = vld [vmem:[%s587_s29] sm:$0xff]  ;;  %778 = vmatpush.msra.mxu0 %v1633_v26  ;;  %v1637_v28 = vld [vmem:[%s2370_s4 + $0x28] sm:$0xff]  ;;  %v1645_v43 = vld [vmem:[%s2372_s6 + $0x38] sm:$0xff]  ;;  %s1621_s29 = sshll.u32 %s577_s21, 3 }
  0x24   : > { %617 = vmatpush.msra.mxu1 %v590_v3  ;;  %vm706_vm2 = vcmp.gt.f32.partialorder %v2048_v15, 0.5  ;;  %v650_v23 = vld [vmem:[%s2372_s6] sm:$0xff]  ;;  %672 = vmatpush.msra.mxu2 %v651_v22  ;;  %v1631_v29 = vld [vmem:[%s2405_s26 + $0x28] sm:$0xff]  ;;  %v1644_v44 = vld [vmem:[%s2372_s6 + $0x30] sm:$0xff]  ;;  %s579_s20 = scalar_lea.vmem [#allocation2], %s1621_s29  ;;  %s1811_s29 = scalar_lea.hbm %s2384_s18, 16 }
  0x25   : > { %1624 = vmatmul.msk.f32.vlgmr.msra.gmra.mxu1 %vm598_vm0, %v2022_v5  ;;  %779 = vmatpush.msra.mxu0 %v1632_v27  ;;  %v1636_v30 = vld [vmem:[%s2370_s4 + $0x20] sm:$0xff]  ;;  %v1643_v45 = vld [vmem:[%s2372_s6 + $0x28] sm:$0xff]  ;;  %s1543_s22 = sshll.u32 %s579_s20, 4  ;;  %s1544_s22 = int_to_ptr.vmem [resolvable:$true] %s1543_s22 }
  0x26   : > { %642 = vmatpush.msrb.mxu1 %v625_v4  ;;  %673 = vmatpush.msra.mxu2 %v650_v23  ;;  %v1630_v31 = vld [vmem:[%s2405_s26 + $0x20] sm:$0xff]  ;;  %v1661_v20 = vld [vmem:[%s2370_s4 + $0x48] sm:$0xff] }
  0x27   : > { %1626 = vmatmul.msk.f32.vlgmr.msra.gmra.mxu2 %vm598_vm0, %v2022_v5  ;;  %780 = vmatpush.msra.mxu0 %v1631_v29  ;;  %v1748_v37 = vld [vmem:[%s2373_s7] ss:$0 sm:$0xff]  ;;  %v1749_v40 = vld [vmem:[%s2371_s5 + $0x1] ss:$0 sm:$0xff] }
  0x28   : > { %643 = vmatpush.msrb.mxu1 %v624_v6  ;;  %838 = vmatpush.msrb.mxu2 %v1645_v43  ;;  %v1642_v47 = vld [vmem:[%s2372_s6 + $0x20] sm:$0xff] }
  0x29   : > { %781 = vmatpush.msra.mxu0 %v1630_v31  ;;  %v1750_v59 = vld [vmem:[%s2407_s3 + $0x1] ss:$0 sm:$0xff] }
  0x2a   : > { %644 = vmatpush.msrb.mxu1 %v623_v7  ;;  %1635 = vmatmul.msk.f32.vlgmr.msra.gmra.mxu0 %vm598_vm0, %v2022_v5  ;;  %v755_v62 = vld [vmem:[%s2374_s8] sm:$0xff] }
  0x2b   : > { %839 = vmatpush.msrb.mxu2 %v1644_v44  ;;  %v1751_v63 = vld [vmem:[%s2373_s7 + $0x1] ss:$0 sm:$0xff] }
  0x2c   : > { %645 = vmatpush.msrb.mxu1 %v622_v8  ;;  %v1660_v21 = vld [vmem:[%s2370_s4 + $0x40] sm:$0xff] }
  0x2d   : > { %1625 = vmatmul.msk.f32.vlgmr.msrb.gmra.mxu1 %vm598_vm0, %v2022_v5  ;;  %840 = vmatpush.msrb.mxu2 %v1643_v45  ;;  %v1689_v15 = vld [vmem:[%s2372_s6 + $0x60] sm:$0xff] }
  0x2e   : > { %808 = vmatpush.msra.mxu1 %v1639_v24 }
  0x2f   : > { %841 = vmatpush.msrb.mxu2 %v1642_v47  ;;  %v1669_v47 = vld [vmem:[%s2372_s6 + $0x58] sm:$0xff] }
  0x30   : > { %809 = vmatpush.msra.mxu1 %v1638_v25  ;;  %1647 = vmatmul.msk.f32.vlgmr.msrb.gmra.mxu2 %vm598_vm0, %v2022_v5 }
  0x31   : > { %964 = vmatpush.msra.mxu2 %v755_v62  ;;  %v1684_v62 = vld [vmem:[%s2370_s4 + $0x68] sm:$0xff] }
  0x32   : > { %810 = vmatpush.msra.mxu1 %v1637_v28 }
  0x34   : > { %811 = vmatpush.msra.mxu1 %v1636_v30 }
  0x35   : > { %1641 = vmatmul.msk.f32.vlgmr.msra.gmra.mxu1 %vm598_vm0, %v2022_v5 }
  0xa2   : > { %v619_v9 = vpop.f32.mrf.mxu1 }
  0xa3   : > { %v620_v14 = vadd.f32 %v1746_v11, %v619_v9 }
  0xa7   : > { %v783_v60 = vpop.f32.mrf.mxu0 }
  0xa8   : > { %v784_v61 = vadd.f32 %v1750_v59, %v783_v60 }
  0xaa   : > { %v647_v12 = vpop.f32.mrf.mxu1  ;;  %v675_v38 = vpop.f32.mrf.mxu2 }
  0xab   : > { %v648_v13 = vadd.f32 %v1747_v10, %v647_v12  ;;  %v676_v39 = vadd.f32 %v1748_v37, %v675_v38  ;;  %v1753_v37 = vld [vmem:[%s2407_s3 + $0x2] ss:$0 sm:$0xff] }
  0xad   : > { %1627 = vmatpush.xpose.msk.msra.mxu3 %vm678_vm1, %v648_v13  ;;  %v1657_v13 = vld [vmem:[%s2405_s26 + $0x58] sm:$0xff] }
  0xb0   : > { %1628 = vmatmul.msk.f32.vlgmr.msra.gmra.mxu3 %vm678_vm1, %v620_v14  ;;  %v1656_v14 = vld [vmem:[%s2405_s26 + $0x50] sm:$0xff] }
  0xb1   : > { %750 = vmatpush.msrb.mxu3 %v676_v39 }
  0xb2   : > { %v813_v41 = vpop.f32.mrf.mxu1 }
  0xb3   : > { %v814_v42 = vadd.f32 %v1749_v40, %v813_v41  ;;  %v843_v0 = vpop.f32.mrf.mxu2 }
  0xb4   : > { %v844_v1 = vadd.f32 %v1751_v63, %v843_v0  ;;  %v1683_v63 = vld [vmem:[%s2370_s4 + $0x60] sm:$0xff]  ;;  %v1680_v0 = vld [vmem:[%s2405_s26 + $0x78] sm:$0xff] }
  0xb5   : > { %1648 = vmatpush.xpose.msk.msra.mxu3 %vm678_vm1, %v814_v42 }
  0xb6   : > { %916 = vmatpush.msrb.mxu0 %v844_v1  ;;  %v1679_v1 = vld [vmem:[%s2405_s26 + $0x70] sm:$0xff] }
 0x133   : > { %v702_v16 = vpop.f32.mrf.mxu3 }
 0x134   : > { %v705_v17 = vmul.f32 0.35355338, %v702_v16  ;;  %v1663_v16 = vld [vmem:[%s2370_s4 + $0x58] sm:$0xff] }
 0x135   : > { %1021 = vmatpush.msra.mxu0 %v1663_v16 }
 0x136   : > { %v707_v18 = vsel %vm706_vm2, -1e+09, %v705_v17  ;;  %v1655_v17 = vld [vmem:[%s2405_s26 + $0x48] sm:$0xff] }
 0x137   : > { %v708_v19 = vsel %vm678_vm1, %v707_v18, -inf }
 0x138   : > { %709 = vmax.xlane.f32.xlu0 %v708_v19  ;;  %v1654_v19 = vld [vmem:[%s2405_s26 + $0x40] sm:$0xff] }
 0x1ab   : > { %v710_v32 = vpop.xlane.xlu0 %709 }
 0x1ac   : > { %v711_v33 = vsub.f32 %v707_v18, %v710_v32  ;;  %v1662_v18 = vld [vmem:[%s2370_s4 + $0x50] sm:$0xff] }
 0x1ad   : > { %1022 = vmatpush.msra.mxu0 %v1662_v18 }
 0x1ae   : > { %v712_v34 = vmul.f32 1.442695, %v711_v33 }
 0x1af   : > { %1023 = vmatpush.msra.mxu0 %v1661_v20 }
 0x1b0   : > { %1765 = vpow2.f32 %v712_v34  ;;  %v1651_v34 = vld [vmem:[%s2374_s8 + $0x8] sm:$0xff] }
 0x1b1   : > { %1024 = vmatpush.msra.mxu0 %v1660_v21  ;;  %941 = vmatpush.msrb.mxu1 %v1651_v34  ;;  %v1691_v34 = vld [vmem:[%s2372_s6 + $0x70] sm:$0xff] }
 0x1b3   : > { %1051 = vmatpush.msra.mxu1 %v1669_v47 }
 0x1b6   : > { %v1766_v35 = vpop.eup %1765 }
 0x1b7   : > { %v714_v36 = vsel %vm678_vm1, %v1766_v35, 0.0 }
 0x1b8   : > { %715 = vadd.xlane.f32.xlu0 %v714_v36  ;;  %v1752_v36 = vld [vmem:[%s2371_s5 + $0x2] ss:$0 sm:$0xff] }
 0x22b   : > { %v716_v46 = vpop.xlane.xlu0 %715 }
 0x22c   : > { %1767 = vrcp.f32 %v716_v46  ;;  %v728_v51 = vand.u32 2147483648, %v716_v46  ;;  %v726_v53 = vand.u32 2147483647, %v716_v46  ;;  %vm722_vm4 = vweird.f32 %v716_v46 }
 0x22e   : > { %v729_v55 = vor.u32 1.1754944e-38, %v728_v51  ;;  %vm727_vm6 = vcmp.eq.f32.partialorder %v726_v53, 8.507059e+37 }
 0x232   : > { %v1768_v48 = vpop.eup %1767 }
 0x233   : > { %v718_v49 = vmul.f32 %v1768_v48, %v716_v46  ;;  %vm723_vm3 = vweird.f32 %v1768_v48 }
 0x234   : > { %vm724_vm5 = vmor %vm722_vm4, %vm723_vm3 }
 0x235   : > { %v719_v50 = vsub.f32 1.0, %v718_v49  ;;  %v1667_v49 = vld [vmem:[%s2372_s6 + $0x48] sm:$0xff] }
 0x237   : > { %v720_v52 = vmul.f32 %v1768_v48, %v719_v50  ;;  %v1666_v50 = vld [vmem:[%s2372_s6 + $0x40] sm:$0xff] }
 0x239   : > { %v721_v54 = vadd.f32 %v1768_v48, %v720_v52 }
 0x23b   : > { %v725_v56 = vsel %vm724_vm5, %v1768_v48, %v721_v54  ;;  %v1668_v48 = vld [vmem:[%s2372_s6 + $0x50] sm:$0xff] }
 0x23c   : > { %v730_v57 = vsel %vm727_vm6, %v729_v55, %v725_v56  ;;  %1052 = vmatpush.msra.mxu1 %v1668_v48 }
 0x23d   : > { %v731_v58 = vmul.f32 %v1766_v35, %v730_v57  ;;  %v1754_v57 = vld [vmem:[%s2373_s7 + $0x2] ss:$0 sm:$0xff] }
 0x23e   : > { %1053 = vmatpush.msra.mxu1 %v1667_v49 }
 0x23f   : > { %1629 = vmatmul.msk.f32.vlgmr.msrb.gmra.mxu3 %vm678_vm1, %v731_v58  ;;  %v1686_v58 = vld [vmem:[%s2370_s4 + $0x78] sm:$0xff] }
 0x240   : > { %991 = vmatpush.msrb.mxu3 %v1657_v13  ;;  %1054 = vmatpush.msra.mxu1 %v1666_v50 }
 0x242   : > { %992 = vmatpush.msrb.mxu3 %v1656_v14 }
 0x244   : > { %993 = vmatpush.msrb.mxu3 %v1655_v17 }
 0x246   : > { %994 = vmatpush.msrb.mxu3 %v1654_v19  ;;  %v1755_v19 = vld [vmem:[%s2371_s5 + $0x3] ss:$0 sm:$0xff] }
 0x247   : > { %1649 = vmatmul.msk.f32.vlgmr.msra.gmra.mxu3 %vm678_vm1, %v784_v61  ;;  %v1685_v61 = vld [vmem:[%s2370_s4 + $0x70] sm:$0xff] }
 0x24f   : > { %1659 = vmatmul.msk.f32.vlgmr.msrb.gmra.mxu3 %vm598_vm0, %v2022_v5 }
 0x2c2   : > { %v752_v2 = vpop.f32.mrf.mxu3 }
 0x2c3   : > { %1653 = vmatmul.msk.f32.vlgmr.msra.gmra.mxu2 %vm678_vm1, %v752_v2  ;;  %v1675_v2 = vld [vmem:[%s2374_s8 + $0x10] sm:$0xff] }
 0x2ca   : > { %v869_v3 = vpop.f32.mrf.mxu3 }
 0x2cb   : > { %v872_v4 = vmul.f32 0.35355338, %v869_v3  ;;  %v1678_v3 = vld [vmem:[%s2405_s26 + $0x68] sm:$0xff] }
 0x2cd   : > { %v873_v6 = vsel %vm706_vm2, -1e+09, %v872_v4  ;;  %v1677_v4 = vld [vmem:[%s2405_s26 + $0x60] sm:$0xff] }
 0x2ce   : > { %v874_v7 = vsel %vm678_vm1, %v873_v6, -inf }
 0x2cf   : > { %875 = vmax.xlane.f32.xlu1 %v874_v7 }
 0x2d2   : > { %v996_v38 = vpop.f32.mrf.mxu3 }
 0x2d3   : > { %v997_v41 = vadd.f32 %v1753_v37, %v996_v38 }
 0x342   : > { %v876_v8 = vpop.xlane.xlu1 %875 }
 0x343   : > { %v877_v9 = vsub.f32 %v873_v6, %v876_v8 }
 0x345   : > { %v878_v10 = vmul.f32 1.442695, %v877_v9 }
 0x346   : > { %v2175_v42 = vpop.f32.mrf.mxu2 }
 0x347   : > { %1769 = vpow2.f32 %v878_v10 }
 0x34d   : > { %v1770_v11 = vpop.eup %1769 }
 0x34e   : > { %v880_v12 = vsel %vm678_vm1, %v1770_v11, 0.0 }
 0x34f   : > { %881 = vadd.xlane.f32.xlu1 %v880_v12 }
 0x3c2   : > { %v882_v22 = vpop.xlane.xlu1 %881 }
 0x3c3   : > { %1771 = vrcp.f32 %v882_v22  ;;  %v894_v26 = vand.u32 2147483648, %v882_v22  ;;  %v892_v28 = vand.u32 2147483647, %v882_v22  ;;  %vm888_vm8 = vweird.f32 %v882_v22 }
 0x3c5   : > { %v895_v30 = vor.u32 1.1754944e-38, %v894_v26  ;;  %vm893_vm10 = vcmp.eq.f32.partialorder %v892_v28, 8.507059e+37 }
 0x3c9   : > { %v1772_v23 = vpop.eup %1771 }
 0x3ca   : > { %v884_v24 = vmul.f32 %v1772_v23, %v882_v22  ;;  %vm889_vm7 = vweird.f32 %v1772_v23 }
 0x3cb   : > { %vm890_vm9 = vmor %vm888_vm8, %vm889_vm7 }
 0x3cc   : > { %v885_v25 = vsub.f32 1.0, %v884_v24 }
 0x3ce   : > { %v886_v27 = vmul.f32 %v1772_v23, %v885_v25 }
 0x3d0   : > { %v887_v29 = vadd.f32 %v1772_v23, %v886_v27 }
 0x3d2   : > { %v891_v31 = vsel %vm890_vm9, %v1772_v23, %v887_v29  ;;  %v1756_v23 = vld [vmem:[%s2407_s3 + $0x3] ss:$0 sm:$0xff]  ;;  %s1545_s3 = sshll.u32 %s1541_s30, 4  ;;  %s1546_s3 = int_to_ptr.hbm [resolvable:$true] %s1545_s3 }
 0x3d3   : > { %v896_v32 = vsel %vm893_vm10, %v895_v30, %v891_v31  ;;  %s1805_s23 = sshra.s32 %s1546_s3, 4  ;;  %s1806_s23 = int_to_ptr.hbm [resolvable:$true] %s1805_s23 }
 0x3d4   : > { %v897_v33 = vmul.f32 %v1770_v11, %v896_v32  ;;  %s1807_s1 = scalar_lea.hbm %s1806_s23, 8  ;;  %p1812_p0 = scmp.lt.s32.totalorder %s1806_s23, %s2384_s18 }
 0x3d5   : > { %p1808_p11 = scmp.ne.s32.totalorder %s1806_s23, %s1807_s1  ;;  %p1813_p1 = scmp.lt.s32.totalorder %s1811_s29, %s1807_s1 }
 0x3d6   : > { %1650 = vmatmul.msk.f32.vlgmr.msrb.gmra.mxu0 %vm678_vm1, %v897_v33  ;;  %v1692_v33 = vld [vmem:[%s2372_s6 + $0x78] sm:$0xff] }
 0x3d7   : > { %1154 = vmatpush.msrb.mxu0 %v1675_v2  ;;  %p1809_p12 = pnand %p1808_p11, %p1989_p5  ;;  %p1814_p2 = por %p1813_p1, %p1812_p0 }
 0x3d9   : > { %p1810_p13 = pneg %p1809_p12 }
 0x3db   : > { %p1815_p3 = pnand %p1814_p2, %p1810_p13 }
 0x3de   : > { %1665 = vmatmul.msk.f32.vlgmr.msra.gmra.mxu0 %vm598_vm0, %v2022_v5 }
 0x453   : > { %v918_v35 = vpop.f32.mrf.mxu0 }
 0x454   : > { %1652 = vmatmul.msk.f32.vlgmr.msrb.gmra.mxu1 %vm678_vm1, %v918_v35  ;;  %v1690_v35 = vld [vmem:[%s2372_s6 + $0x68] sm:$0xff] }
 0x455   : > { %1182 = vmatpush.msrb.mxu1 %v1680_v0  ;;  %v1855_v0 = vmov 32.0  }
 0x457   : > { %1183 = vmatpush.msrb.mxu1 %v1679_v1 }
 0x459   : > { %1184 = vmatpush.msrb.mxu1 %v1678_v3 }
 0x45b   : > { %v1026_v39 = vpop.f32.mrf.mxu0  ;;  %1185 = vmatpush.msrb.mxu1 %v1677_v4 }
 0x45c   : > { %v1027_v40 = vadd.f32 %v1752_v36, %v1026_v39  ;;  %1671 = vmatmul.msk.f32.vlgmr.msra.gmra.mxu1 %vm598_vm0, %v2022_v5 }
 0x45e   : > { %1672 = vmatpush.xpose.msk.msrb.mxu2 %vm678_vm1, %v1027_v40 }
 0x461   : > { %1673 = vmatmul.msk.f32.vlgmr.msrb.gmra.mxu2 %vm678_vm1, %v997_v41  ;;  %v1757_v41 = vld [vmem:[%s2373_s7 + $0x3] ss:$0 sm:$0xff] }
 0x462   : > { %1212 = vmatpush.msra.mxu2 %v1686_v58  ;;  %v1758_v58 = vld [vmem:[%s2375_s9] ss:$0 sm:$0xff] }
 0x464   : > { %1213 = vmatpush.msra.mxu2 %v1685_v61  ;;  %1682 = vmatmul.msk.f32.vlgmr.msrb.gmra.mxu1 %vm598_vm0, %v2022_v5 }
 0x466   : > { %1214 = vmatpush.msra.mxu2 %v1684_v62 }
 0x468   : > { %1215 = vmatpush.msra.mxu2 %v1683_v63 }
 0x469   : > { %1688 = vmatmul.msk.f32.vlgmr.msra.gmra.mxu2 %vm598_vm0, %v2022_v5 }
 0x4d1   : > { %v943_v56 = vpop.f32.mrf.mxu1 }
 0x4d2   : > { %v967_v26 = vadd.f32 %v2175_v42, %v943_v56 }
 0x4d9   : > { %v1056_v59 = vpop.f32.mrf.mxu1 }
 0x4da   : > { %v1057_v60 = vadd.f32 %v1754_v57, %v1056_v59 }
 0x4dc   : > { %1129 = vmatpush.msra.mxu3 %v1057_v60 }
 0x4de   : > { %1242 = vmatpush.msrb.mxu3 %v1692_v33  ;;  %v1447_v33 = vld [vmem:[%s2380_s14 + $0x18] sm:$0xff] }
 0x4e0   : > { %1243 = vmatpush.msrb.mxu3 %v1691_v34 }
 0x4e1   : > { %v1187_v24 = vpop.f32.mrf.mxu1 }
 0x4e2   : > { %v1188_v25 = vadd.f32 %v1756_v23, %v1187_v24  ;;  %1244 = vmatpush.msrb.mxu3 %v1690_v35  ;;  %v1451_v24 = vld [vmem:[%s2380_s14 + $0x38] sm:$0xff] }
 0x4e4   : > { %v1082_v43 = vpop.f32.mrf.mxu2  ;;  %1245 = vmatpush.msrb.mxu3 %v1689_v15 }
 0x4e5   : > { %v1085_v44 = vmul.f32 0.35355338, %v1082_v43 }
 0x4e7   : > { %v1086_v45 = vsel %vm706_vm2, -1e+09, %v1085_v44  ;;  %v1698_v44 = vld [vmem:[%s2374_s8 + $0x18] sm:$0xff] }
 0x4e8   : > { %v1087_v46 = vsel %vm678_vm1, %v1086_v45, -inf  ;;  %1345 = vmatpush.msrb.mxu2 %v1698_v44 }
 0x4e9   : > { %1088 = vmax.xlane.f32.xlu2 %v1087_v46 }
 0x4ec   : > { %v1217_v20 = vpop.f32.mrf.mxu2 }
 0x4ed   : > { %v1218_v21 = vadd.f32 %v1755_v19, %v1217_v20 }
 0x4ef   : > { %1695 = vmatpush.xpose.msk.msra.mxu0 %vm678_vm1, %v1218_v21 }
 0x55c   : > { %v1089_v51 = vpop.xlane.xlu2 %1088 }
 0x55d   : > { %v1090_v52 = vsub.f32 %v1086_v45, %v1089_v51 }
 0x55f   : > { %v1091_v53 = vmul.f32 1.442695, %v1090_v52 }
 0x561   : > { %1773 = vpow2.f32 %v1091_v53 }
 0x567   : > { %v1774_v54 = vpop.eup %1773 }
 0x568   : > { %v1093_v55 = vsel %vm678_vm1, %v1774_v54, 0.0 }
 0x569   : > { %1094 = vadd.xlane.f32.xlu2 %v1093_v55 }
 0x5dc   : > { %v1095_v6 = vpop.xlane.xlu2 %1094 }
 0x5dd   : > { %1775 = vrcp.f32 %v1095_v6  ;;  %v1107_v10 = vand.u32 2147483648, %v1095_v6  ;;  %v1105_v12 = vand.u32 2147483647, %v1095_v6  ;;  %vm1101_vm12 = vweird.f32 %v1095_v6 }
 0x5df   : > { %v1108_v14 = vor.u32 1.1754944e-38, %v1107_v10  ;;  %vm1106_vm14 = vcmp.eq.f32.partialorder %v1105_v12, 8.507059e+37  ;;  %v1415_v12 = vld [vmem:[%s2378_s12 + $0x18] sm:$0xff] }
 0x5e3   : > { %v1776_v7 = vpop.eup %1775 }
 0x5e4   : > { %v1097_v8 = vmul.f32 %v1776_v7, %v1095_v6  ;;  %vm1102_vm11 = vweird.f32 %v1776_v7 }
 0x5e5   : > { %vm1103_vm13 = vmor %vm1101_vm12, %vm1102_vm11  ;;  %vm1456_vm11 = vcmask 523264  }
 0x5e6   : > { %v1098_v9 = vsub.f32 1.0, %v1097_v8 }
 0x5e8   : > { %v1099_v11 = vmul.f32 %v1776_v7, %v1098_v9 }
 0x5ea   : > { %v1100_v13 = vadd.f32 %v1776_v7, %v1099_v11 }
 0x5ec   : > { %v1104_v16 = vsel %vm1103_vm13, %v1776_v7, %v1100_v13  ;;  %v1414_v13 = vld [vmem:[%s2378_s12 + $0x10] sm:$0xff] }
 0x5ed   : > { %v1109_v17 = vsel %vm1106_vm14, %v1108_v14, %v1104_v16  ;;  %v1413_v14 = vld [vmem:[%s2378_s12 + $0x8] sm:$0xff]  ;;  %v1412_v16 = vld [vmem:[%s2378_s12] sm:$0xff] }
 0x5ee   : > { %v1110_v18 = vmul.f32 %v1774_v54, %v1109_v17 }
 0x5f0   : > { %1674 = vmatmul.msk.f32.vlgmr.msra.gmra.mxu3 %vm678_vm1, %v1110_v18 }
 0x5f1   : > { %1435 = vmatpush.msra.mxu3 %v1415_v12 }
 0x5f3   : > { %1436 = vmatpush.msra.mxu3 %v1414_v13 }
 0x5f5   : > { %1437 = vmatpush.msra.mxu3 %v1413_v14 }
 0x5f7   : > { %1438 = vmatpush.msra.mxu3 %v1412_v16 }
 0x5f8   : > { %1694 = vmatmul.msk.f32.vlgmr.msrb.gmra.mxu3 %vm598_vm0, %v2022_v5 }
 0x673   : > { %v1131_v22 = vpop.f32.mrf.mxu3 }
 0x674   : > { %1676 = vmatmul.msk.f32.vlgmr.msrb.gmra.mxu0 %vm678_vm1, %v1131_v22 }
 0x675   : > { %1468 = vmatpush.msrb.mxu0 %v1451_v24 }
 0x67b   : > { %v1247_v42 = vpop.f32.mrf.mxu3 }
 0x67c   : > { %1696 = vmatmul.msk.f32.vlgmr.msra.gmra.mxu0 %vm678_vm1, %v1188_v25  ;;  %v1248_v43 = vadd.f32 %v1757_v41, %v1247_v42  ;;  %v1450_v25 = vld [vmem:[%s2380_s14 + $0x30] sm:$0xff] }
 0x67d   : > { %1469 = vmatpush.msrb.mxu0 %v1450_v25  ;;  %v1763_v25 = vld [vmem:[%s2382_s16] ss:$0 sm:$0xff] }
 0x67e   : > { %1320 = vmatpush.msra.mxu1 %v1248_v43  ;;  %v1759_v43 = vld [vmem:[%s2376_s10] ss:$0 sm:$0xff] }
 0x6f1   : > { %v1156_v27 = vpop.f32.mrf.mxu0 }
 0x6f2   : > { %v1159_v28 = vadd.f32 %v1156_v27, %v967_v26  ;;  %v1449_v27 = vld [vmem:[%s2380_s14 + $0x28] sm:$0xff] }
 0x6f3   : > { %1470 = vmatpush.msrb.mxu0 %v1449_v27 }
 0x6f9   : > { %v1273_v29 = vpop.f32.mrf.mxu0 }
 0x6fa   : > { %v1276_v30 = vmul.f32 0.35355338, %v1273_v29 }
 0x6fc   : > { %v1277_v31 = vsel %vm706_vm2, -1e+09, %v1276_v30  ;;  %v1448_v30 = vld [vmem:[%s2380_s14 + $0x20] sm:$0xff] }
 0x6fd   : > { %v1278_v32 = vsel %vm678_vm1, %v1277_v31, -inf  ;;  %1471 = vmatpush.msrb.mxu0 %v1448_v30 }
 0x6fe   : > { %1279 = vmax.xlane.f32.xlu0 %v1278_v32 }
 0x6ff   : > { %1472 = vmatpush.msrb.mxu0 %v1447_v33 }
 0x771   : > { %v1280_v36 = vpop.xlane.xlu0 %1279 }
 0x772   : > { %v1281_v37 = vsub.f32 %v1277_v31, %v1280_v36 }
 0x774   : > { %v1282_v38 = vmul.f32 1.442695, %v1281_v37 }
 0x776   : > { %1777 = vpow2.f32 %v1282_v38 }
 0x77c   : > { %v1778_v39 = vpop.eup %1777 }
 0x77d   : > { %v1284_v40 = vsel %vm678_vm1, %v1778_v39, 0.0 }
 0x77e   : > { %1285 = vadd.xlane.f32.xlu1 %v1284_v40 }
 0x7f1   : > { %v1286_v45 = vpop.xlane.xlu1 %1285 }
 0x7f2   : > { %1779 = vrcp.f32 %v1286_v45  ;;  %v1298_v49 = vand.u32 2147483648, %v1286_v45  ;;  %v1296_v51 = vand.u32 2147483647, %v1286_v45  ;;  %vm1292_vm2 = vweird.f32 %v1286_v45 }
 0x7f3   : > { %1781 = vrcp.f32 %v1855_v0 }
 0x7f4   : > { %v1299_v53 = vor.u32 1.1754944e-38, %v1298_v49  ;;  %vm1297_vm4 = vcmp.eq.f32.partialorder %v1296_v51, 8.507059e+37  ;;  %v1446_v49 = vld [vmem:[%s2380_s14 + $0x10] sm:$0xff]  ;;  %v1444_v51 = vld [vmem:[%s2380_s14] sm:$0xff] }
 0x7f5   : > { %1473 = vmatpush.msrb.mxu0 %v1446_v49 }
 0x7f8   : > { %v1780_v46 = vpop.eup %1779 }
 0x7f9   : > { %v1288_v47 = vmul.f32 %v1780_v46, %v1286_v45  ;;  %vm1293_vm15 = vweird.f32 %v1780_v46  ;;  %v1782_v1 = vpop.eup %1781 }
 0x7fa   : > { %vm1294_vm3 = vmor %vm1292_vm2, %vm1293_vm15  ;;  %v1363_v2 = vmul.f32 32.0, %v1782_v1 }
 0x7fb   : > { %v1289_v48 = vsub.f32 1.0, %v1288_v47 }
 0x7fc   : > { %v1364_v3 = vsub.f32 1.0, %v1363_v2 }
 0x7fd   : > { %v1290_v50 = vmul.f32 %v1780_v46, %v1289_v48 }
 0x7fe   : > { %v1365_v4 = vmul.f32 %v1782_v1, %v1364_v3 }
 0x7ff   : > { %v1291_v52 = vadd.f32 %v1780_v46, %v1290_v50  ;;  %v1445_v50 = vld [vmem:[%s2380_s14 + $0x8] sm:$0xff] }
 0x800   : > { %v1366_v6 = vadd.f32 %v1782_v1, %v1365_v4  ;;  %1474 = vmatpush.msrb.mxu0 %v1445_v50 }
 0x801   : > { %v1295_v54 = vsel %vm1294_vm3, %v1780_v46, %v1291_v52  ;;  %v1760_v46 = vld [vmem:[%s2377_s11] ss:$0 sm:$0xff] }
 0x802   : > { %v1300_v55 = vsel %vm1297_vm4, %v1299_v53, %v1295_v54  ;;  %1475 = vmatpush.msrb.mxu0 %v1444_v51  ;;  %v1761_v52 = vld [vmem:[%s2379_s13] ss:$0 sm:$0xff] }
 0x803   : > { %v1301_v56 = vmul.f32 %v1778_v39, %v1300_v55 }
 0x805   : > { %1697 = vmatmul.msk.f32.vlgmr.msra.gmra.mxu1 %vm678_vm1, %v1301_v56  ;;  %v1762_v56 = vld [vmem:[%s2381_s15] ss:$0 sm:$0xff] }
 0x882   : > { %v1322_v57 = vpop.f32.mrf.mxu1 }
 0x883   : > { %1699 = vmatmul.msk.f32.vlgmr.msrb.gmra.mxu2 %vm678_vm1, %v1322_v57  ;;  %vm1367_vm1 = vweird.f32 %v1782_v1 }
 0x884   : > { %v2271_v7 = vsel %vm1367_vm1, %v1782_v1, %v1366_v6 }
 0x906   : > { %v1347_v59 = vpop.f32.mrf.mxu2 }
 0x907   : > { %v1350_v60 = vadd.f32 %v1347_v59, %v1159_v28 }
 0x909   : > { %v1355_v61 = vadd.f32 %v1758_v58, %v1350_v60 }
 0x90b   : > { %v1356_v62 = vadd.f32 %v1355_v61, %v2022_v5 }
 0x90d   : > { %v1359_v63 = vsel %vm598_vm0, %v1356_v62, 0.0 }
 0x90e   : > { %1360 = vadd.xlane.f32.xlu2 %v1359_v63 }
 0x981   : > { %v1361_v8 = vpop.xlane.xlu2 %1360 }
 0x982   : > { %v1369_v9 = vmul.f32 %v2271_v7, %v1361_v8 }
 0x984   : > { %v1370_v10 = vsub.f32 %v1356_v62, %v1369_v9 }
 0x986   : > { %v1371_v11 = vmul.f32 %v1370_v10, %v1370_v10 }
 0x988   : > { %v1372_v5 = vsel %vm598_vm0, %v1371_v11, 0.0 }
 0x989   : > { %1373 = vadd.xlane.f32.xlu0 %v1372_v5 }
 0x9fc   : > { %v1374_v17 = vpop.xlane.xlu0 %1373 }
 0x9fd   : > { %v1375_v18 = vmul.f32 0.032258064, %v1374_v17 }
 0x9ff   : > { %1783 = vrsqrt.f32 %v1375_v18  ;;  %vm1383_vm5 = vcmp.eq.f32.partialorder %v1375_v18, inf  ;;  %v1386_v29 = vand.u32 2147483648, %v1375_v18  ;;  %vm1385_vm6 = vcmp.eq.f32.partialorder %v1375_v18, 0.0 }
 0xa05   : > { %v1784_v19 = vpop.eup %1783 }
 0xa06   : > { %v1377_v20 = vmul.f32 %v1784_v19, %v1375_v18 }
 0xa08   : > { %v1378_v21 = vmul.f32 %v1784_v19, %v1377_v20 }
 0xa0a   : > { %v1379_v22 = vmul.f32 0.5, %v1378_v21 }
 0xa0c   : > { %v1380_v23 = vsub.f32 1.5, %v1379_v22 }
 0xa0e   : > { %v1381_v26 = vmul.f32 %v1784_v19, %v1380_v23 }
 0xa10   : > { %v1382_v28 = vmul.f32 %v1381_v26, %v1375_v18 }
 0xa12   : > { %v1384_v31 = vsel %vm1383_vm5, %v1375_v18, %v1382_v28  ;;  %v1764_v28 = vld [vmem:[%s2409_s0] ss:$0 sm:$0xff] }
 0xa13   : > { %v1387_v32 = vsel %vm1385_vm6, %v1386_v29, %v1384_v31 }
 0xa14   : > { %v1388_v34 = vadd.f32 1e-06, %v1387_v32 }
 0xa16   : > { %1785 = vrcp.f32 %v1388_v34  ;;  %v1400_v37 = vand.u32 2147483648, %v1388_v34  ;;  %v1398_v39 = vand.u32 2147483647, %v1388_v34  ;;  %vm1394_vm8 = vweird.f32 %v1388_v34 }
 0xa18   : > { %v1401_v41 = vor.u32 1.1754944e-38, %v1400_v37  ;;  %vm1399_vm10 = vcmp.eq.f32.partialorder %v1398_v39, 8.507059e+37 }
 0xa1c   : > { %v1786_v35 = vpop.eup %1785 }
 0xa1d   : > { %v1390_v15 = vmul.f32 %v1786_v35, %v1388_v34  ;;  %vm1395_vm7 = vweird.f32 %v1786_v35 }
 0xa1e   : > { %vm1396_vm9 = vmor %vm1394_vm8, %vm1395_vm7 }
 0xa1f   : > { %v1391_v36 = vsub.f32 1.0, %v1390_v15 }
 0xa21   : > { %v1392_v38 = vmul.f32 %v1786_v35, %v1391_v36 }
 0xa23   : > { %v1393_v40 = vadd.f32 %v1786_v35, %v1392_v38 }
 0xa25   : > { %v1397_v42 = vsel %vm1396_vm9, %v1786_v35, %v1393_v40 }
 0xa26   : > { %v1402_v44 = vsel %vm1399_vm10, %v1401_v41, %v1397_v42 }
 0xa27   : > { %v1403_v45 = vmul.f32 %v1402_v44, %v1370_v10 }
 0xa29   : > { %v1407_v47 = vmul.f32 %v1759_v43, %v1403_v45 }
 0xa2b   : > { %v1411_v48 = vadd.f32 %v1760_v46, %v1407_v47 }
 0xa2d   : > { %1700 = vmatmul.msk.f32.vlgmr.msra.gmra.mxu3 %vm598_vm0, %v1411_v48 }
 0xab0   : > { %v1440_v53 = vpop.f32.mrf.mxu3 }
 0xab1   : > { %v1441_v54 = vadd.f32 %v1761_v52, %v1440_v53 }
 0xab3   : > { %v1443_v55 = vmax.f32 %v1441_v54, 0.0 }
 0xab5   : > { %1701 = vmatmul.msk.f32.vlgmr.msrb.gmra.mxu0 %vm1456_vm11, %v1443_v55 }
 0xb32   : > { %v1477_v57 = vpop.f32.mrf.mxu0 }
 0xb33   : > { %v1478_v58 = vadd.f32 %v1762_v56, %v1477_v57 }
 0xb35   : > { %v1480_v59 = vadd.f32 %v1478_v58, %v1411_v48 }
 0xb37   : > { %v1483_v60 = vsel %vm598_vm0, %v1480_v59, 0.0 }
 0xb38   : > { %1484 = vadd.xlane.f32.xlu1 %v1483_v60 }
 0xbab   : > { %v1485_v61 = vpop.xlane.xlu1 %1484 }
 0xbac   : > { %v1486_v62 = vmul.f32 %v1485_v61, %v2271_v7 }
 0xbae   : > { %v1487_v63 = vsub.f32 %v1480_v59, %v1486_v62 }
 0xbb0   : > { %v1488_v0 = vmul.f32 %v1487_v63, %v1487_v63 }
 0xbb2   : > { %v1489_v1 = vsel %vm598_vm0, %v1488_v0, 0.0 }
 0xbb3   : > { %1490 = vadd.xlane.f32.xlu2 %v1489_v1 }
 0xc26   : > { %v1491_v2 = vpop.xlane.xlu2 %1490 }
 0xc27   : > { %v1492_v3 = vmul.f32 0.032258064, %v1491_v2 }
 0xc29   : > { %1787 = vrsqrt.f32 %v1492_v3  ;;  %vm1500_vm12 = vcmp.eq.f32.partialorder %v1492_v3, inf  ;;  %v1503_v12 = vand.u32 2147483648, %v1492_v3  ;;  %vm1502_vm13 = vcmp.eq.f32.partialorder %v1492_v3, 0.0 }
 0xc2f   : > { %v1788_v4 = vpop.eup %1787 }
 0xc30   : > { %v1494_v6 = vmul.f32 %v1788_v4, %v1492_v3 }
 0xc32   : > { %v1495_v8 = vmul.f32 %v1788_v4, %v1494_v6 }
 0xc34   : > { %v1496_v9 = vmul.f32 0.5, %v1495_v8 }
 0xc36   : > { %v1497_v10 = vsub.f32 1.5, %v1496_v9 }
 0xc38   : > { %v1498_v11 = vmul.f32 %v1788_v4, %v1497_v10 }
 0xc3a   : > { %v1499_v5 = vmul.f32 %v1498_v11, %v1492_v3 }
 0xc3c   : > { %v1501_v7 = vsel %vm1500_vm12, %v1492_v3, %v1499_v5 }
 0xc3d   : > { %v1504_v13 = vsel %vm1502_vm13, %v1503_v12, %v1501_v7 }
 0xc3e   : > { %v1505_v14 = vadd.f32 1e-06, %v1504_v13 }
 0xc40   : > { %1789 = vrcp.f32 %v1505_v14  ;;  %v1517_v19 = vand.u32 2147483648, %v1505_v14  ;;  %v1515_v21 = vand.u32 2147483647, %v1505_v14  ;;  %vm1511_vm15 = vweird.f32 %v1505_v14 }
 0xc42   : > { %v1518_v23 = vor.u32 1.1754944e-38, %v1517_v19  ;;  %vm1516_vm3 = vcmp.eq.f32.partialorder %v1515_v21, 8.507059e+37 }
 0xc46   : > { %v1790_v16 = vpop.eup %1789 }
 0xc47   : > { %v1507_v17 = vmul.f32 %v1790_v16, %v1505_v14  ;;  %vm1512_vm14 = vweird.f32 %v1790_v16 }
 0xc48   : > { %vm1513_vm2 = vmor %vm1511_vm15, %vm1512_vm14 }
 0xc49   : > { %v1508_v18 = vsub.f32 1.0, %v1507_v17 }
 0xc4b   : > { %v1509_v20 = vmul.f32 %v1790_v16, %v1508_v18 }
 0xc4d   : > { %v1510_v22 = vadd.f32 %v1790_v16, %v1509_v20 }
 0xc4f   : > { %v1514_v24 = vsel %vm1513_vm2, %v1790_v16, %v1510_v22 }
 0xc50   : > { %v1519_v26 = vsel %vm1516_vm3, %v1518_v23, %v1514_v24 }
 0xc51   : > { %v1520_v27 = vmul.f32 %v1519_v26, %v1487_v63 }
 0xc53   : > { %v1524_v29 = vmul.f32 %v1763_v25, %v1520_v27 }
 0xc55   : > { %v1528_v30 = vadd.f32 %v1764_v28, %v1524_v29 }
 0xc57   : > { %1529 = vst.msk [vmem:[%s579_s20] sm:$0xff] %vm598_vm0, %v1528_v30 }
 0xc58   : > { %1818 = shalt.err (!%p1815_p3)
}
 0xc59   : > { %1706 = dma.vmem_to_hbm [thread:$0]  (%p1989_p5), %s1544_s22, 128, %s1546_s3, %s1531_s27  }
 0xc5a PF: > { %s2410_s21 = sld [smem:[#allocation7_spill]] }
 0xc5b   : > { %s2411_s19 = sld [smem:[#allocation5_spill]] }
 0xc60   : > { %p1712_p4 = scmp.ge.s32.totalorder %s2410_s21, 2 }
 0xc61   : > { %s1557_s20 = sand.u32 1, %s2411_s19  }
 0xc62   : > { %p1709_p7 = pnand %p1712_p4, %p1993_p6  ;;  %s1558_s17 = scalar_lea.sflag [#allocation3], %s1557_s20 }
 0xc64   : > { %p1710_p8 = pneg %p1709_p7 }
 0xc66   : > { %1836 = dma.done.wait (%p1710_p8), %s1558_s17, 128  }
 0xc67   : > { %1838 = vsyncadd (%p1710_p8), %s1558_s17, 4294967168  ;;  %s2413_s30 = sld [smem:[#allocation8_spill]]  ;;  %s2416_s27 = smov %s1845_s28 }
 0xc68   : > { %s2414_s23 = sld [smem:[#allocation6_spill]] }
 0xc69   : > { %s2415_s29 = sld [smem:[#allocation9_spill]] }
 0xc6d   : > { %p28_p9 = scmp.ge.s32.totalorder %s2413_s30, 4  }
 0xc6e   : > { %s2417_s28 = smov %s2414_s23 }
 0xc6f   :  { %30 = sbr.rel (!%p28_p9) target bundleno = 9 (0x9), region = 151 }
 0xc74   :  { %1564 = vsyncpa [#allocation3], 1 }
 0xc75   :  { %1566 = vsyncpa [#allocation3 + $0x1], 1 }

</bundles_post_ra>
